<compile_context>
chip_gen: v5e
topology: v5e:2x2
jax: 0.10.0
libtpu: 0.0.40
codegen_flags: <defaults>
</compile_context>

<pallas_src>
import functools
import numpy as np
import jax
import jax.numpy as jnp
from jax.experimental import pallas as pl
from jax.experimental.pallas import tpu as pltpu

LN_EPS = 1e-5  # PyTorch nn.LayerNorm default


# ----------------------------- kernel helpers ------------------------------

def _layernorm(y, gamma, beta):
    mean = jnp.mean(y, axis=-1, keepdims=True)
    var = jnp.mean((y - mean) ** 2, axis=-1, keepdims=True)
    return (y - mean) * jax.lax.rsqrt(var + LN_EPS) * gamma + beta


# --------------------------- fused Pallas kernel ----------------------------

def fused_forward_kernel(
    x_ref, pos_ref, mats_ref, vecs_ref, o_ref,
    *, n_layers, n_head, d_k, d_v, d_src, d_emb, d_inner, batch, seq, mo, vo):
    """Whole forward pass; activations kept as flattened (B*S, C) tokens.

    mats_ref / vecs_ref are packed parameter slabs; `mo` / `vo` hold static
    8-aligned row offsets, so every parameter access is a free static slice.
    """
    BS = batch * seq

    def mat(off, r, c):           # (r, c) weight matrix from the mats slab
        return mats_ref[off:off + r, 0:c]

    def vec(off, c):              # (1, c) bias / LN vector from the vecs slab
        return vecs_ref[off:off + 1, 0:c]

    x = x_ref[...]                                            # (B*S, d_src)

    # ---- ffn_compressed: Conv1d(k=1) -> relu -> Conv1d(k=1) -> LayerNorm ----
    h = jnp.maximum(
        jnp.dot(x, mat(mo['fw1'], d_src, d_emb),
                preferred_element_type=jnp.float32) + vec(vo['fb1'], d_emb),
        0.0)
    h = jnp.dot(h, mat(mo['fw2'], d_emb, d_emb),
                preferred_element_type=jnp.float32) + vec(vo['fb2'], d_emb)
    h = _layernorm(h, vec(vo['fg'], d_emb), vec(vo['fbt'], d_emb))   # (B*S, D)

    # ---- encoder: sinusoid positional embedding (gathered on host) ----
    h = h + pos_ref[...]

    inv_temp = 1.0 / float(np.sqrt(d_k))
    d_qkv = n_head * (2 * d_k + d_v)
    k_base = n_head * d_k
    v_base = 2 * n_head * d_k

    for li in range(n_layers):                                # static unroll
        # ------------------ multi-head self-attention ------------------
        residual = h
        # Single fused lane-dense QKV projection: (B*S, D) @ (D, 3*H*d_k).
        qkv = jnp.dot(h, mat(mo['wqkv'][li], d_emb, d_qkv),
                      preferred_element_type=jnp.float32) + vec(vo['bqkv'][li], d_qkv)

        ctx_heads = []
        for hh in range(n_head):                              # static unroll
            # Static lane slices of the (B*S, 96) projection result.
            qh = qkv[:, hh * d_k:(hh + 1) * d_k].reshape(batch, seq, d_k)
            kh = qkv[:, k_base + hh * d_k:k_base + (hh + 1) * d_k].reshape(batch, seq, d_k)
            vh = qkv[:, v_base + hh * d_v:v_base + (hh + 1) * d_v].reshape(batch, seq, d_v)
            # TODO(synk): scores could be batched over heads to share the tiny
            # K transpose, but the per-head einsum is negligible at S=8.
            s = jnp.einsum('bsd,btd->bst', qh, kh,
                           preferred_element_type=jnp.float32) * inv_temp
            s = s - jnp.max(s, axis=-1, keepdims=True)
            e = jnp.exp(s)
            attn = e / jnp.sum(e, axis=-1, keepdims=True)     # exact softmax
            ctx = jnp.einsum('bst,btd->bsd', attn, vh,
                             preferred_element_type=jnp.float32)
            ctx_heads.append(ctx.reshape(BS, d_v))
        # Reassemble heads along the lane axis (32 lanes) -> ONE output proj.
        ctx_flat = jnp.concatenate(ctx_heads, axis=-1)        # (B*S, H*d_v)
        out = jnp.dot(ctx_flat, mat(mo['wo'][li], n_head * d_v, d_emb),
                      preferred_element_type=jnp.float32) + vec(vo['bo'][li], d_emb)
        h = _layernorm(out + residual,
                       vec(vo['ag'][li], d_emb), vec(vo['abt'][li], d_emb))

        # ------------------ position-wise feed-forward ------------------
        residual = h
        ph = jnp.maximum(
            jnp.dot(h, mat(mo['pw1'][li], d_emb, d_inner),
                    preferred_element_type=jnp.float32) + vec(vo['pb1'][li], d_inner),
            0.0)
        po = jnp.dot(ph, mat(mo['pw2'][li], d_inner, d_emb),
                     preferred_element_type=jnp.float32) + vec(vo['pb2'][li], d_emb)
        h = _layernorm(po + residual,
                       vec(vo['pg'][li], d_emb), vec(vo['pbt'][li], d_emb))

    # ---- head: AvgPool1d(d_emb) over emb axis -> squeeze -> FC -> softmax ----
    h3 = h.reshape(batch, seq, d_emb)                         # (B, S, D)
    pooled = jnp.mean(h3, axis=-1)                            # (B, S)
    logits = jnp.dot(pooled, mat(mo['wfc'], seq, 2),
                     preferred_element_type=jnp.float32) + vec(vo['bfc'], 2)   # (B, 2)
    z = logits - jnp.max(logits, axis=-1, keepdims=True)
    e = jnp.exp(z)
    o_ref[...] = e / jnp.sum(e, axis=-1, keepdims=True)


# --------------------------- host-side param packing ------------------------

class _Packer:
    """Packs 2D arrays as 8-row-aligned blocks of a (R, 128) f32 slab."""

    def __init__(self, width=128, align=8):
        self.width, self.align = width, align
        self.blocks, self.row = [], 0

    def add(self, a):
        a = np.asarray(a, np.float32)
        if a.ndim == 1:
            a = a[None, :]
        r, c = a.shape
        rp = -(-r // self.align) * self.align
        blk = np.zeros((rp, self.width), np.float32)
        blk[:r, :c] = a
        off = self.row
        self.blocks.append(blk)
        self.row += rp
        return off

    def slab(self):
        return jnp.asarray(np.concatenate(self.blocks, axis=0))


def pack_params(p, n_layers):
    mp, vp = _Packer(), _Packer()
    mo, vo = {}, {}
    f, a, pf = p["ffn"], p["attn"], p["pffn"]

    mo['fw1'] = mp.add(f['w1']); vo['fb1'] = vp.add(f['b1'])
    mo['fw2'] = mp.add(f['w2']); vo['fb2'] = vp.add(f['b2'])
    vo['fg'] = vp.add(f['g']);   vo['fbt'] = vp.add(f['bt'])

    for name in ('wqkv', 'wo', 'pw1', 'pw2'):
        mo[name] = []
    for name in ('bqkv', 'bo', 'ag', 'abt', 'pb1', 'pb2', 'pg', 'pbt'):
        vo[name] = []
    for li in range(n_layers):
        mo['wqkv'].append(mp.add(a['wqkv'][li])); vo['bqkv'].append(vp.add(a['bqkv'][li]))
        mo['wo'].append(mp.add(a['wo'][li]));     vo['bo'].append(vp.add(a['bo'][li]))
        vo['ag'].append(vp.add(a['g'][li]));      vo['abt'].append(vp.add(a['bt'][li]))
        mo['pw1'].append(mp.add(pf['w1'][li]));   vo['pb1'].append(vp.add(pf['b1'][li]))
        mo['pw2'].append(mp.add(pf['w2'][li]));   vo['pb2'].append(vp.add(pf['b2'][li]))
        vo['pg'].append(vp.add(pf['g'][li]));     vo['pbt'].append(vp.add(pf['bt'][li]))

    mo['wfc'] = mp.add(p['fc']['w']); vo['bfc'] = vp.add(p['fc']['b'])
    return mp.slab(), vp.slab(), mo, vo


# ------------------------------ call wrapper --------------------------------

def model_forward(params, x, x_pos, *, n_layers, n_head, d_k, d_v):
    B, S, d_src = x.shape
    d_emb = params["ffn"]["w2"].shape[1]
    d_inner = params["pffn"]["w1"].shape[2]

    x_flat = x.reshape(B * S, d_src)
    pos_flat = params["pos_table"][x_pos].reshape(B * S, d_emb)  # tiny host gather

    mats, vecs, mo, vo = pack_params(params, n_layers)

    kern = functools.partial(
        fused_forward_kernel,
        n_layers=n_layers, n_head=n_head, d_k=d_k, d_v=d_v,
        d_src=d_src, d_emb=d_emb, d_inner=d_inner, batch=B, seq=S,
        mo=mo, vo=vo)

    vmem = pl.BlockSpec(memory_space=pltpu.MemorySpace.VMEM)
    return pl.pallas_call(
        kern,
        out_shape=jax.ShapeDtypeStruct((B, 2), jnp.float32),
        in_specs=[vmem, vmem, vmem, vmem],
        out_specs=vmem,
    )(x_flat, pos_flat, mats, vecs)


# ------------------------------ parameters ----------------------------------

def _dense(key, fan_in, fan_out):
    kw, kb = jax.random.split(key)
    w = jax.random.normal(kw, (fan_in, fan_out), jnp.float32) / np.sqrt(fan_in)
    b = 0.01 * jax.random.normal(kb, (1, fan_out), jnp.float32)
    return w, b


def sinusoid_table(n_position, d_hid):
    pos = np.arange(n_position, dtype=np.float64)[:, None]
    idx = np.arange(d_hid, dtype=np.float64)[None, :]
    angle = pos / np.power(10000.0, 2.0 * (idx // 2) / d_hid)
    tab = np.zeros((n_position, d_hid), dtype=np.float32)
    tab[:, 0::2] = np.sin(angle[:, 0::2])
    tab[:, 1::2] = np.cos(angle[:, 1::2])
    tab[0, :] = 0.0  # padding_idx = 0
    return jnp.asarray(tab)


def init_params(key, d_src, d_emb, d_inner, n_head, d_k, d_v, len_seq, n_layers):
    ks = jax.random.split(key, 3 + n_layers)
    p = {}

    # ffn_compressed: Conv1d(d_src, d_emb, 1) -> relu -> Conv1d(d_emb, d_emb, 1) -> LN
    w1, b1 = _dense(ks[0], d_src, d_emb)
    w2, b2 = _dense(ks[1], d_emb, d_emb)
    p["ffn"] = dict(w1=w1, b1=b1, w2=w2, b2=b2,
                    g=jnp.ones((1, d_emb), jnp.float32),
                    bt=jnp.zeros((1, d_emb), jnp.float32))

    # encoder layers: fused QKV weights (d_emb, 3*H*d_k) column-grouped
    # [Q heads | K heads | V heads], lane-dense as used by the kernel.
    d_qkv = n_head * (2 * d_k + d_v)
    wqkv_l, bqkv_l, wo_l, bo_l, ag_l, abt_l = ([] for _ in range(6))
    pw1_l, pb1_l, pw2_l, pb2_l, pg_l, pbt_l = ([] for _ in range(6))
    for li in range(n_layers):
        sub = jax.random.split(ks[2 + li], 4)
        wqkv, bqkv = _dense(sub[0], d_emb, d_qkv)
        wo, bo = _dense(sub[1], n_head * d_v, d_emb)
        fw1, fb1 = _dense(sub[2], d_emb, d_inner)
        fw2, fb2 = _dense(sub[3], d_inner, d_emb)
        wqkv_l.append(wqkv); bqkv_l.append(bqkv)
        wo_l.append(wo);     bo_l.append(bo)
        ag_l.append(jnp.ones((1, d_emb), jnp.float32))
        abt_l.append(jnp.zeros((1, d_emb), jnp.float32))
        pw1_l.append(fw1); pb1_l.append(fb1)
        pw2_l.append(fw2); pb2_l.append(fb2)
        pg_l.append(jnp.ones((1, d_emb), jnp.float32))
        pbt_l.append(jnp.zeros((1, d_emb), jnp.float32))

    stack = lambda xs: jnp.stack(xs, axis=0)
    p["attn"] = dict(wqkv=stack(wqkv_l), bqkv=stack(bqkv_l), wo=stack(wo_l),
                     bo=stack(bo_l), g=stack(ag_l), bt=stack(abt_l))
    p["pffn"] = dict(w1=stack(pw1_l), b1=stack(pb1_l), w2=stack(pw2_l),
                     b2=stack(pb2_l), g=stack(pg_l), bt=stack(pbt_l))

    # final classifier: Linear(len_seq, 2)
    wfc, bfc = _dense(ks[-1], len_seq, 2)
    p["fc"] = dict(w=wfc, b=bfc)
    p["pos_table"] = sinusoid_table(len_seq + 1, d_emb)
    return p


# ----------------------------------- main ------------------------------------

if __name__ == "__main__":
    # hyperparameters implied by the module's __init__
    d_src_vec, len_seq, d_emb_vec = 16, 8, 32
    n_layers, n_head = 2, 4
    d_k = d_v = d_emb_vec // n_head
    d_inner = 64
    B = 2

    key = jax.random.PRNGKey(0)
    kx, kp = jax.random.split(key)
    x = jax.random.normal(kx, (B, len_seq, d_src_vec), jnp.float32)
    x_pos = jnp.tile(jnp.arange(1, len_seq + 1, dtype=jnp.int32)[None, :], (B, 1))

    params = init_params(kp, d_src_vec, d_emb_vec, d_inner,
                         n_head, d_k, d_v, len_seq, n_layers)

    out = model_forward(params, x, x_pos,
                        n_layers=n_layers, n_head=n_head, d_k=d_k, d_v=d_v)
    out = jax.block_until_ready(out)
    assert out.shape == (B, 2)
    assert bool(jnp.all(jnp.isfinite(out)))
    assert bool(jnp.allclose(jnp.sum(out, axis=-1), 1.0, atol=1e-4))
    print("KERNEL_OK")
</pallas_src>

<mosaic_0001>
module attributes {stable_mosaic.version = 11 : i64} {
  func.func @fused_forward_kernel(%arg0: memref<16x16xf32, #tpu.memory_space<vmem>>, %arg1: memref<16x32xf32, #tpu.memory_space<vmem>>, %arg2: memref<376x128xf32, #tpu.memory_space<vmem>>, %arg3: memref<168x128xf32, #tpu.memory_space<vmem>>, %arg4: memref<2x2xf32, #tpu.memory_space<vmem>>) attributes {dimension_semantics = [], scalar_prefetch = 0 : i64, scratch_operands = 0 : i64, tpu.core_type = #tpu.core_type<tc>} {
    %c0 = arith.constant 0 : index
    %c0_0 = arith.constant 0 : index
    %0 = vector.load %arg0[%c0, %c0_0] : memref<16x16xf32, #tpu.memory_space<vmem>>, vector<16x16xf32>
    %c0_1 = arith.constant 0 : index
    %c0_2 = arith.constant 0 : index
    %1 = vector.load %arg2[%c0_1, %c0_2] : memref<376x128xf32, #tpu.memory_space<vmem>>, vector<16x32xf32>
    %cst = arith.constant dense<0.000000e+00> : vector<16x32xf32>
    %2 = tpu.matmul %0, %1, %cst {dimension_numbers = #tpu.dot_dimension_numbers<[1], [0], [0], [1], [0, 0, 1, 1], [], []>} : vector<16x16xf32>, vector<16x32xf32>, vector<16x32xf32> -> vector<16x32xf32>
    %c0_3 = arith.constant 0 : index
    %c0_4 = arith.constant 0 : index
    %3 = vector.load %arg3[%c0_3, %c0_4] : memref<168x128xf32, #tpu.memory_space<vmem>>, vector<1x32xf32>
    %4 = vector.broadcast %3 : vector<1x32xf32> to vector<16x32xf32>
    %5 = arith.addf %2, %4 : vector<16x32xf32>
    %cst_5 = arith.constant 0.000000e+00 : f32
    %6 = vector.broadcast %cst_5 : f32 to vector<16x32xf32>
    %7 = arith.maximumf %5, %6 : vector<16x32xf32>
    %c16 = arith.constant 16 : index
    %c0_6 = arith.constant 0 : index
    %8 = vector.load %arg2[%c16, %c0_6] : memref<376x128xf32, #tpu.memory_space<vmem>>, vector<32x32xf32>
    %cst_7 = arith.constant dense<0.000000e+00> : vector<16x32xf32>
    %9 = tpu.matmul %7, %8, %cst_7 {dimension_numbers = #tpu.dot_dimension_numbers<[1], [0], [0], [1], [0, 0, 1, 1], [], []>} : vector<16x32xf32>, vector<32x32xf32>, vector<16x32xf32> -> vector<16x32xf32>
    %c8 = arith.constant 8 : index
    %c0_8 = arith.constant 0 : index
    %10 = vector.load %arg3[%c8, %c0_8] : memref<168x128xf32, #tpu.memory_space<vmem>>, vector<1x32xf32>
    %11 = vector.broadcast %10 : vector<1x32xf32> to vector<16x32xf32>
    %12 = arith.addf %9, %11 : vector<16x32xf32>
    %c16_9 = arith.constant 16 : index
    %c0_10 = arith.constant 0 : index
    %13 = vector.load %arg3[%c16_9, %c0_10] : memref<168x128xf32, #tpu.memory_space<vmem>>, vector<1x32xf32>
    %c24 = arith.constant 24 : index
    %c0_11 = arith.constant 0 : index
    %14 = vector.load %arg3[%c24, %c0_11] : memref<168x128xf32, #tpu.memory_space<vmem>>, vector<1x32xf32>
    %cst_12 = arith.constant dense<0.000000e+00> : vector<16xf32>
    %15 = vector.multi_reduction <add>, %12, %cst_12 [1] : vector<16x32xf32> to vector<16xf32>
    %16 = vector.shape_cast %15 : vector<16xf32> to vector<16x1xf32>
    %cst_13 = arith.constant 3.200000e+01 : f32
    %17 = vector.broadcast %cst_13 : f32 to vector<16x1xf32>
    %18 = arith.divf %16, %17 : vector<16x1xf32>
    %19 = vector.broadcast %18 : vector<16x1xf32> to vector<16x32xf32>
    %20 = arith.subf %12, %19 : vector<16x32xf32>
    %21 = arith.mulf %20, %20 : vector<16x32xf32>
    %cst_14 = arith.constant dense<0.000000e+00> : vector<16xf32>
    %22 = vector.multi_reduction <add>, %21, %cst_14 [1] : vector<16x32xf32> to vector<16xf32>
    %23 = vector.shape_cast %22 : vector<16xf32> to vector<16x1xf32>
    %cst_15 = arith.constant 3.200000e+01 : f32
    %24 = vector.broadcast %cst_15 : f32 to vector<16x1xf32>
    %25 = arith.divf %23, %24 : vector<16x1xf32>
    %26 = vector.broadcast %18 : vector<16x1xf32> to vector<16x32xf32>
    %27 = arith.subf %12, %26 : vector<16x32xf32>
    %cst_16 = arith.constant 9.99999974E-6 : f32
    %28 = vector.broadcast %cst_16 : f32 to vector<16x1xf32>
    %29 = arith.addf %25, %28 : vector<16x1xf32>
    %30 = math.rsqrt %29 : vector<16x1xf32>
    %31 = vector.broadcast %30 : vector<16x1xf32> to vector<16x32xf32>
    %32 = arith.mulf %27, %31 : vector<16x32xf32>
    %33 = vector.broadcast %13 : vector<1x32xf32> to vector<16x32xf32>
    %34 = arith.mulf %32, %33 : vector<16x32xf32>
    %35 = vector.broadcast %14 : vector<1x32xf32> to vector<16x32xf32>
    %36 = arith.addf %34, %35 : vector<16x32xf32>
    %c0_17 = arith.constant 0 : index
    %c0_18 = arith.constant 0 : index
    %37 = vector.load %arg1[%c0_17, %c0_18] : memref<16x32xf32, #tpu.memory_space<vmem>>, vector<16x32xf32>
    %38 = arith.addf %36, %37 : vector<16x32xf32>
    %c48 = arith.constant 48 : index
    %c0_19 = arith.constant 0 : index
    %39 = vector.load %arg2[%c48, %c0_19] : memref<376x128xf32, #tpu.memory_space<vmem>>, vector<32x96xf32>
    %cst_20 = arith.constant dense<0.000000e+00> : vector<16x96xf32>
    %40 = tpu.matmul %38, %39, %cst_20 {dimension_numbers = #tpu.dot_dimension_numbers<[1], [0], [0], [1], [0, 0, 1, 1], [], []>} : vector<16x32xf32>, vector<32x96xf32>, vector<16x96xf32> -> vector<16x96xf32>
    %c32 = arith.constant 32 : index
    %c0_21 = arith.constant 0 : index
    %41 = vector.load %arg3[%c32, %c0_21] : memref<168x128xf32, #tpu.memory_space<vmem>>, vector<1x96xf32>
    %42 = vector.broadcast %41 : vector<1x96xf32> to vector<16x96xf32>
    %43 = arith.addf %40, %42 : vector<16x96xf32>
    %44 = vector.extract_strided_slice %43 {offsets = [0, 0], sizes = [16, 8], strides = [1, 1]} : vector<16x96xf32> to vector<16x8xf32>
    %45 = vector.shape_cast %44 : vector<16x8xf32> to vector<2x8x8xf32>
    %46 = vector.extract_strided_slice %43 {offsets = [0, 32], sizes = [16, 8], strides = [1, 1]} : vector<16x96xf32> to vector<16x8xf32>
    %47 = vector.shape_cast %46 : vector<16x8xf32> to vector<2x8x8xf32>
    %48 = vector.extract_strided_slice %43 {offsets = [0, 64], sizes = [16, 8], strides = [1, 1]} : vector<16x96xf32> to vector<16x8xf32>
    %49 = vector.shape_cast %48 : vector<16x8xf32> to vector<2x8x8xf32>
    "tpu.trace_start"() <{level = 10 : i32, message = "bsd,btd->bst"}> : () -> ()
    %cst_22 = arith.constant dense<0.000000e+00> : vector<2x8x8xf32>
    %50 = tpu.matmul %45, %47, %cst_22 {dimension_numbers = #tpu.dot_dimension_numbers<[2], [2], [1], [1], [0, 0, 0, 1, 1, 1], [0], [0]>} : vector<2x8x8xf32>, vector<2x8x8xf32>, vector<2x8x8xf32> -> vector<2x8x8xf32>
    "tpu.trace_stop"() : () -> ()
    %cst_23 = arith.constant 0.353553385 : f32
    %51 = vector.broadcast %cst_23 : f32 to vector<2x8x8xf32>
    %52 = arith.mulf %50, %51 : vector<2x8x8xf32>
    %cst_24 = arith.constant dense<0xFF800000> : vector<2x8xf32>
    %53 = vector.multi_reduction <maximumf>, %52, %cst_24 [2] : vector<2x8x8xf32> to vector<2x8xf32>
    %54 = vector.shape_cast %53 : vector<2x8xf32> to vector<2x8x1xf32>
    %55 = vector.broadcast %54 : vector<2x8x1xf32> to vector<2x8x8xf32>
    %56 = arith.subf %52, %55 : vector<2x8x8xf32>
    %57 = math.exp %56 : vector<2x8x8xf32>
    %cst_25 = arith.constant dense<0.000000e+00> : vector<2x8xf32>
    %58 = vector.multi_reduction <add>, %57, %cst_25 [2] : vector<2x8x8xf32> to vector<2x8xf32>
    %59 = vector.shape_cast %58 : vector<2x8xf32> to vector<2x8x1xf32>
    %60 = vector.broadcast %59 : vector<2x8x1xf32> to vector<2x8x8xf32>
    %61 = arith.divf %57, %60 : vector<2x8x8xf32>
    "tpu.trace_start"() <{level = 10 : i32, message = "bst,btd->bsd"}> : () -> ()
    %cst_26 = arith.constant dense<0.000000e+00> : vector<2x8x8xf32>
    %62 = tpu.matmul %61, %49, %cst_26 {dimension_numbers = #tpu.dot_dimension_numbers<[2], [1], [1], [2], [0, 0, 0, 1, 1, 2], [0], [0]>} : vector<2x8x8xf32>, vector<2x8x8xf32>, vector<2x8x8xf32> -> vector<2x8x8xf32>
    "tpu.trace_stop"() : () -> ()
    %63 = vector.shape_cast %62 : vector<2x8x8xf32> to vector<16x8xf32>
    %64 = vector.extract_strided_slice %43 {offsets = [0, 8], sizes = [16, 8], strides = [1, 1]} : vector<16x96xf32> to vector<16x8xf32>
    %65 = vector.shape_cast %64 : vector<16x8xf32> to vector<2x8x8xf32>
    %66 = vector.extract_strided_slice %43 {offsets = [0, 40], sizes = [16, 8], strides = [1, 1]} : vector<16x96xf32> to vector<16x8xf32>
    %67 = vector.shape_cast %66 : vector<16x8xf32> to vector<2x8x8xf32>
    %68 = vector.extract_strided_slice %43 {offsets = [0, 72], sizes = [16, 8], strides = [1, 1]} : vector<16x96xf32> to vector<16x8xf32>
    %69 = vector.shape_cast %68 : vector<16x8xf32> to vector<2x8x8xf32>
    "tpu.trace_start"() <{level = 10 : i32, message = "bsd,btd->bst"}> : () -> ()
    %cst_27 = arith.constant dense<0.000000e+00> : vector<2x8x8xf32>
    %70 = tpu.matmul %65, %67, %cst_27 {dimension_numbers = #tpu.dot_dimension_numbers<[2], [2], [1], [1], [0, 0, 0, 1, 1, 1], [0], [0]>} : vector<2x8x8xf32>, vector<2x8x8xf32>, vector<2x8x8xf32> -> vector<2x8x8xf32>
    "tpu.trace_stop"() : () -> ()
    %cst_28 = arith.constant 0.353553385 : f32
    %71 = vector.broadcast %cst_28 : f32 to vector<2x8x8xf32>
    %72 = arith.mulf %70, %71 : vector<2x8x8xf32>
    %cst_29 = arith.constant dense<0xFF800000> : vector<2x8xf32>
    %73 = vector.multi_reduction <maximumf>, %72, %cst_29 [2] : vector<2x8x8xf32> to vector<2x8xf32>
    %74 = vector.shape_cast %73 : vector<2x8xf32> to vector<2x8x1xf32>
    %75 = vector.broadcast %74 : vector<2x8x1xf32> to vector<2x8x8xf32>
    %76 = arith.subf %72, %75 : vector<2x8x8xf32>
    %77 = math.exp %76 : vector<2x8x8xf32>
    %cst_30 = arith.constant dense<0.000000e+00> : vector<2x8xf32>
    %78 = vector.multi_reduction <add>, %77, %cst_30 [2] : vector<2x8x8xf32> to vector<2x8xf32>
    %79 = vector.shape_cast %78 : vector<2x8xf32> to vector<2x8x1xf32>
    %80 = vector.broadcast %79 : vector<2x8x1xf32> to vector<2x8x8xf32>
    %81 = arith.divf %77, %80 : vector<2x8x8xf32>
    "tpu.trace_start"() <{level = 10 : i32, message = "bst,btd->bsd"}> : () -> ()
    %cst_31 = arith.constant dense<0.000000e+00> : vector<2x8x8xf32>
    %82 = tpu.matmul %81, %69, %cst_31 {dimension_numbers = #tpu.dot_dimension_numbers<[2], [1], [1], [2], [0, 0, 0, 1, 1, 2], [0], [0]>} : vector<2x8x8xf32>, vector<2x8x8xf32>, vector<2x8x8xf32> -> vector<2x8x8xf32>
    "tpu.trace_stop"() : () -> ()
    %83 = vector.shape_cast %82 : vector<2x8x8xf32> to vector<16x8xf32>
    %84 = vector.extract_strided_slice %43 {offsets = [0, 16], sizes = [16, 8], strides = [1, 1]} : vector<16x96xf32> to vector<16x8xf32>
    %85 = vector.shape_cast %84 : vector<16x8xf32> to vector<2x8x8xf32>
    %86 = vector.extract_strided_slice %43 {offsets = [0, 48], sizes = [16, 8], strides = [1, 1]} : vector<16x96xf32> to vector<16x8xf32>
    %87 = vector.shape_cast %86 : vector<16x8xf32> to vector<2x8x8xf32>
    %88 = vector.extract_strided_slice %43 {offsets = [0, 80], sizes = [16, 8], strides = [1, 1]} : vector<16x96xf32> to vector<16x8xf32>
    %89 = vector.shape_cast %88 : vector<16x8xf32> to vector<2x8x8xf32>
    "tpu.trace_start"() <{level = 10 : i32, message = "bsd,btd->bst"}> : () -> ()
    %cst_32 = arith.constant dense<0.000000e+00> : vector<2x8x8xf32>
    %90 = tpu.matmul %85, %87, %cst_32 {dimension_numbers = #tpu.dot_dimension_numbers<[2], [2], [1], [1], [0, 0, 0, 1, 1, 1], [0], [0]>} : vector<2x8x8xf32>, vector<2x8x8xf32>, vector<2x8x8xf32> -> vector<2x8x8xf32>
    "tpu.trace_stop"() : () -> ()
    %cst_33 = arith.constant 0.353553385 : f32
    %91 = vector.broadcast %cst_33 : f32 to vector<2x8x8xf32>
    %92 = arith.mulf %90, %91 : vector<2x8x8xf32>
    %cst_34 = arith.constant dense<0xFF800000> : vector<2x8xf32>
    %93 = vector.multi_reduction <maximumf>, %92, %cst_34 [2] : vector<2x8x8xf32> to vector<2x8xf32>
    %94 = vector.shape_cast %93 : vector<2x8xf32> to vector<2x8x1xf32>
    %95 = vector.broadcast %94 : vector<2x8x1xf32> to vector<2x8x8xf32>
    %96 = arith.subf %92, %95 : vector<2x8x8xf32>
    %97 = math.exp %96 : vector<2x8x8xf32>
    %cst_35 = arith.constant dense<0.000000e+00> : vector<2x8xf32>
    %98 = vector.multi_reduction <add>, %97, %cst_35 [2] : vector<2x8x8xf32> to vector<2x8xf32>
    %99 = vector.shape_cast %98 : vector<2x8xf32> to vector<2x8x1xf32>
    %100 = vector.broadcast %99 : vector<2x8x1xf32> to vector<2x8x8xf32>
    %101 = arith.divf %97, %100 : vector<2x8x8xf32>
    "tpu.trace_start"() <{level = 10 : i32, message = "bst,btd->bsd"}> : () -> ()
    %cst_36 = arith.constant dense<0.000000e+00> : vector<2x8x8xf32>
    %102 = tpu.matmul %101, %89, %cst_36 {dimension_numbers = #tpu.dot_dimension_numbers<[2], [1], [1], [2], [0, 0, 0, 1, 1, 2], [0], [0]>} : vector<2x8x8xf32>, vector<2x8x8xf32>, vector<2x8x8xf32> -> vector<2x8x8xf32>
    "tpu.trace_stop"() : () -> ()
    %103 = vector.shape_cast %102 : vector<2x8x8xf32> to vector<16x8xf32>
    %104 = vector.extract_strided_slice %43 {offsets = [0, 24], sizes = [16, 8], strides = [1, 1]} : vector<16x96xf32> to vector<16x8xf32>
    %105 = vector.shape_cast %104 : vector<16x8xf32> to vector<2x8x8xf32>
    %106 = vector.extract_strided_slice %43 {offsets = [0, 56], sizes = [16, 8], strides = [1, 1]} : vector<16x96xf32> to vector<16x8xf32>
    %107 = vector.shape_cast %106 : vector<16x8xf32> to vector<2x8x8xf32>
    %108 = vector.extract_strided_slice %43 {offsets = [0, 88], sizes = [16, 8], strides = [1, 1]} : vector<16x96xf32> to vector<16x8xf32>
    %109 = vector.shape_cast %108 : vector<16x8xf32> to vector<2x8x8xf32>
    "tpu.trace_start"() <{level = 10 : i32, message = "bsd,btd->bst"}> : () -> ()
    %cst_37 = arith.constant dense<0.000000e+00> : vector<2x8x8xf32>
    %110 = tpu.matmul %105, %107, %cst_37 {dimension_numbers = #tpu.dot_dimension_numbers<[2], [2], [1], [1], [0, 0, 0, 1, 1, 1], [0], [0]>} : vector<2x8x8xf32>, vector<2x8x8xf32>, vector<2x8x8xf32> -> vector<2x8x8xf32>
    "tpu.trace_stop"() : () -> ()
    %cst_38 = arith.constant 0.353553385 : f32
    %111 = vector.broadcast %cst_38 : f32 to vector<2x8x8xf32>
    %112 = arith.mulf %110, %111 : vector<2x8x8xf32>
    %cst_39 = arith.constant dense<0xFF800000> : vector<2x8xf32>
    %113 = vector.multi_reduction <maximumf>, %112, %cst_39 [2] : vector<2x8x8xf32> to vector<2x8xf32>
    %114 = vector.shape_cast %113 : vector<2x8xf32> to vector<2x8x1xf32>
    %115 = vector.broadcast %114 : vector<2x8x1xf32> to vector<2x8x8xf32>
    %116 = arith.subf %112, %115 : vector<2x8x8xf32>
    %117 = math.exp %116 : vector<2x8x8xf32>
    %cst_40 = arith.constant dense<0.000000e+00> : vector<2x8xf32>
    %118 = vector.multi_reduction <add>, %117, %cst_40 [2] : vector<2x8x8xf32> to vector<2x8xf32>
    %119 = vector.shape_cast %118 : vector<2x8xf32> to vector<2x8x1xf32>
    %120 = vector.broadcast %119 : vector<2x8x1xf32> to vector<2x8x8xf32>
    %121 = arith.divf %117, %120 : vector<2x8x8xf32>
    "tpu.trace_start"() <{level = 10 : i32, message = "bst,btd->bsd"}> : () -> ()
    %cst_41 = arith.constant dense<0.000000e+00> : vector<2x8x8xf32>
    %122 = tpu.matmul %121, %109, %cst_41 {dimension_numbers = #tpu.dot_dimension_numbers<[2], [1], [1], [2], [0, 0, 0, 1, 1, 2], [0], [0]>} : vector<2x8x8xf32>, vector<2x8x8xf32>, vector<2x8x8xf32> -> vector<2x8x8xf32>
    "tpu.trace_stop"() : () -> ()
    %123 = vector.shape_cast %122 : vector<2x8x8xf32> to vector<16x8xf32>
    %124 = tpu.concatenate %63, %83, %103, %123 in 1 : vector<16x8xf32>, vector<16x8xf32>, vector<16x8xf32>, vector<16x8xf32> -> vector<16x32xf32>
    %c80 = arith.constant 80 : index
    %c0_42 = arith.constant 0 : index
    %125 = vector.load %arg2[%c80, %c0_42] : memref<376x128xf32, #tpu.memory_space<vmem>>, vector<32x32xf32>
    %cst_43 = arith.constant dense<0.000000e+00> : vector<16x32xf32>
    %126 = tpu.matmul %124, %125, %cst_43 {dimension_numbers = #tpu.dot_dimension_numbers<[1], [0], [0], [1], [0, 0, 1, 1], [], []>} : vector<16x32xf32>, vector<32x32xf32>, vector<16x32xf32> -> vector<16x32xf32>
    %c40 = arith.constant 40 : index
    %c0_44 = arith.constant 0 : index
    %127 = vector.load %arg3[%c40, %c0_44] : memref<168x128xf32, #tpu.memory_space<vmem>>, vector<1x32xf32>
    %128 = vector.broadcast %127 : vector<1x32xf32> to vector<16x32xf32>
    %129 = arith.addf %126, %128 : vector<16x32xf32>
    %130 = arith.addf %129, %38 : vector<16x32xf32>
    %c48_45 = arith.constant 48 : index
    %c0_46 = arith.constant 0 : index
    %131 = vector.load %arg3[%c48_45, %c0_46] : memref<168x128xf32, #tpu.memory_space<vmem>>, vector<1x32xf32>
    %c56 = arith.constant 56 : index
    %c0_47 = arith.constant 0 : index
    %132 = vector.load %arg3[%c56, %c0_47] : memref<168x128xf32, #tpu.memory_space<vmem>>, vector<1x32xf32>
    %cst_48 = arith.constant dense<0.000000e+00> : vector<16xf32>
    %133 = vector.multi_reduction <add>, %130, %cst_48 [1] : vector<16x32xf32> to vector<16xf32>
    %134 = vector.shape_cast %133 : vector<16xf32> to vector<16x1xf32>
    %cst_49 = arith.constant 3.200000e+01 : f32
    %135 = vector.broadcast %cst_49 : f32 to vector<16x1xf32>
    %136 = arith.divf %134, %135 : vector<16x1xf32>
    %137 = vector.broadcast %136 : vector<16x1xf32> to vector<16x32xf32>
    %138 = arith.subf %130, %137 : vector<16x32xf32>
    %139 = arith.mulf %138, %138 : vector<16x32xf32>
    %cst_50 = arith.constant dense<0.000000e+00> : vector<16xf32>
    %140 = vector.multi_reduction <add>, %139, %cst_50 [1] : vector<16x32xf32> to vector<16xf32>
    %141 = vector.shape_cast %140 : vector<16xf32> to vector<16x1xf32>
    %cst_51 = arith.constant 3.200000e+01 : f32
    %142 = vector.broadcast %cst_51 : f32 to vector<16x1xf32>
    %143 = arith.divf %141, %142 : vector<16x1xf32>
    %144 = vector.broadcast %136 : vector<16x1xf32> to vector<16x32xf32>
    %145 = arith.subf %130, %144 : vector<16x32xf32>
    %cst_52 = arith.constant 9.99999974E-6 : f32
    %146 = vector.broadcast %cst_52 : f32 to vector<16x1xf32>
    %147 = arith.addf %143, %146 : vector<16x1xf32>
    %148 = math.rsqrt %147 : vector<16x1xf32>
    %149 = vector.broadcast %148 : vector<16x1xf32> to vector<16x32xf32>
    %150 = arith.mulf %145, %149 : vector<16x32xf32>
    %151 = vector.broadcast %131 : vector<1x32xf32> to vector<16x32xf32>
    %152 = arith.mulf %150, %151 : vector<16x32xf32>
    %153 = vector.broadcast %132 : vector<1x32xf32> to vector<16x32xf32>
    %154 = arith.addf %152, %153 : vector<16x32xf32>
    %c112 = arith.constant 112 : index
    %c0_53 = arith.constant 0 : index
    %155 = vector.load %arg2[%c112, %c0_53] : memref<376x128xf32, #tpu.memory_space<vmem>>, vector<32x64xf32>
    %cst_54 = arith.constant dense<0.000000e+00> : vector<16x64xf32>
    %156 = tpu.matmul %154, %155, %cst_54 {dimension_numbers = #tpu.dot_dimension_numbers<[1], [0], [0], [1], [0, 0, 1, 1], [], []>} : vector<16x32xf32>, vector<32x64xf32>, vector<16x64xf32> -> vector<16x64xf32>
    %c64 = arith.constant 64 : index
    %c0_55 = arith.constant 0 : index
    %157 = vector.load %arg3[%c64, %c0_55] : memref<168x128xf32, #tpu.memory_space<vmem>>, vector<1x64xf32>
    %158 = vector.broadcast %157 : vector<1x64xf32> to vector<16x64xf32>
    %159 = arith.addf %156, %158 : vector<16x64xf32>
    %cst_56 = arith.constant 0.000000e+00 : f32
    %160 = vector.broadcast %cst_56 : f32 to vector<16x64xf32>
    %161 = arith.maximumf %159, %160 : vector<16x64xf32>
    %c144 = arith.constant 144 : index
    %c0_57 = arith.constant 0 : index
    %162 = vector.load %arg2[%c144, %c0_57] : memref<376x128xf32, #tpu.memory_space<vmem>>, vector<64x32xf32>
    %cst_58 = arith.constant dense<0.000000e+00> : vector<16x32xf32>
    %163 = tpu.matmul %161, %162, %cst_58 {dimension_numbers = #tpu.dot_dimension_numbers<[1], [0], [0], [1], [0, 0, 1, 1], [], []>} : vector<16x64xf32>, vector<64x32xf32>, vector<16x32xf32> -> vector<16x32xf32>
    %c72 = arith.constant 72 : index
    %c0_59 = arith.constant 0 : index
    %164 = vector.load %arg3[%c72, %c0_59] : memref<168x128xf32, #tpu.memory_space<vmem>>, vector<1x32xf32>
    %165 = vector.broadcast %164 : vector<1x32xf32> to vector<16x32xf32>
    %166 = arith.addf %163, %165 : vector<16x32xf32>
    %167 = arith.addf %166, %154 : vector<16x32xf32>
    %c80_60 = arith.constant 80 : index
    %c0_61 = arith.constant 0 : index
    %168 = vector.load %arg3[%c80_60, %c0_61] : memref<168x128xf32, #tpu.memory_space<vmem>>, vector<1x32xf32>
    %c88 = arith.constant 88 : index
    %c0_62 = arith.constant 0 : index
    %169 = vector.load %arg3[%c88, %c0_62] : memref<168x128xf32, #tpu.memory_space<vmem>>, vector<1x32xf32>
    %cst_63 = arith.constant dense<0.000000e+00> : vector<16xf32>
    %170 = vector.multi_reduction <add>, %167, %cst_63 [1] : vector<16x32xf32> to vector<16xf32>
    %171 = vector.shape_cast %170 : vector<16xf32> to vector<16x1xf32>
    %cst_64 = arith.constant 3.200000e+01 : f32
    %172 = vector.broadcast %cst_64 : f32 to vector<16x1xf32>
    %173 = arith.divf %171, %172 : vector<16x1xf32>
    %174 = vector.broadcast %173 : vector<16x1xf32> to vector<16x32xf32>
    %175 = arith.subf %167, %174 : vector<16x32xf32>
    %176 = arith.mulf %175, %175 : vector<16x32xf32>
    %cst_65 = arith.constant dense<0.000000e+00> : vector<16xf32>
    %177 = vector.multi_reduction <add>, %176, %cst_65 [1] : vector<16x32xf32> to vector<16xf32>
    %178 = vector.shape_cast %177 : vector<16xf32> to vector<16x1xf32>
    %cst_66 = arith.constant 3.200000e+01 : f32
    %179 = vector.broadcast %cst_66 : f32 to vector<16x1xf32>
    %180 = arith.divf %178, %179 : vector<16x1xf32>
    %181 = vector.broadcast %173 : vector<16x1xf32> to vector<16x32xf32>
    %182 = arith.subf %167, %181 : vector<16x32xf32>
    %cst_67 = arith.constant 9.99999974E-6 : f32
    %183 = vector.broadcast %cst_67 : f32 to vector<16x1xf32>
    %184 = arith.addf %180, %183 : vector<16x1xf32>
    %185 = math.rsqrt %184 : vector<16x1xf32>
    %186 = vector.broadcast %185 : vector<16x1xf32> to vector<16x32xf32>
    %187 = arith.mulf %182, %186 : vector<16x32xf32>
    %188 = vector.broadcast %168 : vector<1x32xf32> to vector<16x32xf32>
    %189 = arith.mulf %187, %188 : vector<16x32xf32>
    %190 = vector.broadcast %169 : vector<1x32xf32> to vector<16x32xf32>
    %191 = arith.addf %189, %190 : vector<16x32xf32>
    %c208 = arith.constant 208 : index
    %c0_68 = arith.constant 0 : index
    %192 = vector.load %arg2[%c208, %c0_68] : memref<376x128xf32, #tpu.memory_space<vmem>>, vector<32x96xf32>
    %cst_69 = arith.constant dense<0.000000e+00> : vector<16x96xf32>
    %193 = tpu.matmul %191, %192, %cst_69 {dimension_numbers = #tpu.dot_dimension_numbers<[1], [0], [0], [1], [0, 0, 1, 1], [], []>} : vector<16x32xf32>, vector<32x96xf32>, vector<16x96xf32> -> vector<16x96xf32>
    %c96 = arith.constant 96 : index
    %c0_70 = arith.constant 0 : index
    %194 = vector.load %arg3[%c96, %c0_70] : memref<168x128xf32, #tpu.memory_space<vmem>>, vector<1x96xf32>
    %195 = vector.broadcast %194 : vector<1x96xf32> to vector<16x96xf32>
    %196 = arith.addf %193, %195 : vector<16x96xf32>
    %197 = vector.extract_strided_slice %196 {offsets = [0, 0], sizes = [16, 8], strides = [1, 1]} : vector<16x96xf32> to vector<16x8xf32>
    %198 = vector.shape_cast %197 : vector<16x8xf32> to vector<2x8x8xf32>
    %199 = vector.extract_strided_slice %196 {offsets = [0, 32], sizes = [16, 8], strides = [1, 1]} : vector<16x96xf32> to vector<16x8xf32>
    %200 = vector.shape_cast %199 : vector<16x8xf32> to vector<2x8x8xf32>
    %201 = vector.extract_strided_slice %196 {offsets = [0, 64], sizes = [16, 8], strides = [1, 1]} : vector<16x96xf32> to vector<16x8xf32>
    %202 = vector.shape_cast %201 : vector<16x8xf32> to vector<2x8x8xf32>
    "tpu.trace_start"() <{level = 10 : i32, message = "bsd,btd->bst"}> : () -> ()
    %cst_71 = arith.constant dense<0.000000e+00> : vector<2x8x8xf32>
    %203 = tpu.matmul %198, %200, %cst_71 {dimension_numbers = #tpu.dot_dimension_numbers<[2], [2], [1], [1], [0, 0, 0, 1, 1, 1], [0], [0]>} : vector<2x8x8xf32>, vector<2x8x8xf32>, vector<2x8x8xf32> -> vector<2x8x8xf32>
    "tpu.trace_stop"() : () -> ()
    %cst_72 = arith.constant 0.353553385 : f32
    %204 = vector.broadcast %cst_72 : f32 to vector<2x8x8xf32>
    %205 = arith.mulf %203, %204 : vector<2x8x8xf32>
    %cst_73 = arith.constant dense<0xFF800000> : vector<2x8xf32>
    %206 = vector.multi_reduction <maximumf>, %205, %cst_73 [2] : vector<2x8x8xf32> to vector<2x8xf32>
    %207 = vector.shape_cast %206 : vector<2x8xf32> to vector<2x8x1xf32>
    %208 = vector.broadcast %207 : vector<2x8x1xf32> to vector<2x8x8xf32>
    %209 = arith.subf %205, %208 : vector<2x8x8xf32>
    %210 = math.exp %209 : vector<2x8x8xf32>
    %cst_74 = arith.constant dense<0.000000e+00> : vector<2x8xf32>
    %211 = vector.multi_reduction <add>, %210, %cst_74 [2] : vector<2x8x8xf32> to vector<2x8xf32>
    %212 = vector.shape_cast %211 : vector<2x8xf32> to vector<2x8x1xf32>
    %213 = vector.broadcast %212 : vector<2x8x1xf32> to vector<2x8x8xf32>
    %214 = arith.divf %210, %213 : vector<2x8x8xf32>
    "tpu.trace_start"() <{level = 10 : i32, message = "bst,btd->bsd"}> : () -> ()
    %cst_75 = arith.constant dense<0.000000e+00> : vector<2x8x8xf32>
    %215 = tpu.matmul %214, %202, %cst_75 {dimension_numbers = #tpu.dot_dimension_numbers<[2], [1], [1], [2], [0, 0, 0, 1, 1, 2], [0], [0]>} : vector<2x8x8xf32>, vector<2x8x8xf32>, vector<2x8x8xf32> -> vector<2x8x8xf32>
    "tpu.trace_stop"() : () -> ()
    %216 = vector.shape_cast %215 : vector<2x8x8xf32> to vector<16x8xf32>
    %217 = vector.extract_strided_slice %196 {offsets = [0, 8], sizes = [16, 8], strides = [1, 1]} : vector<16x96xf32> to vector<16x8xf32>
    %218 = vector.shape_cast %217 : vector<16x8xf32> to vector<2x8x8xf32>
    %219 = vector.extract_strided_slice %196 {offsets = [0, 40], sizes = [16, 8], strides = [1, 1]} : vector<16x96xf32> to vector<16x8xf32>
    %220 = vector.shape_cast %219 : vector<16x8xf32> to vector<2x8x8xf32>
    %221 = vector.extract_strided_slice %196 {offsets = [0, 72], sizes = [16, 8], strides = [1, 1]} : vector<16x96xf32> to vector<16x8xf32>
    %222 = vector.shape_cast %221 : vector<16x8xf32> to vector<2x8x8xf32>
    "tpu.trace_start"() <{level = 10 : i32, message = "bsd,btd->bst"}> : () -> ()
    %cst_76 = arith.constant dense<0.000000e+00> : vector<2x8x8xf32>
    %223 = tpu.matmul %218, %220, %cst_76 {dimension_numbers = #tpu.dot_dimension_numbers<[2], [2], [1], [1], [0, 0, 0, 1, 1, 1], [0], [0]>} : vector<2x8x8xf32>, vector<2x8x8xf32>, vector<2x8x8xf32> -> vector<2x8x8xf32>
    "tpu.trace_stop"() : () -> ()
    %cst_77 = arith.constant 0.353553385 : f32
    %224 = vector.broadcast %cst_77 : f32 to vector<2x8x8xf32>
    %225 = arith.mulf %223, %224 : vector<2x8x8xf32>
    %cst_78 = arith.constant dense<0xFF800000> : vector<2x8xf32>
    %226 = vector.multi_reduction <maximumf>, %225, %cst_78 [2] : vector<2x8x8xf32> to vector<2x8xf32>
    %227 = vector.shape_cast %226 : vector<2x8xf32> to vector<2x8x1xf32>
    %228 = vector.broadcast %227 : vector<2x8x1xf32> to vector<2x8x8xf32>
    %229 = arith.subf %225, %228 : vector<2x8x8xf32>
    %230 = math.exp %229 : vector<2x8x8xf32>
    %cst_79 = arith.constant dense<0.000000e+00> : vector<2x8xf32>
    %231 = vector.multi_reduction <add>, %230, %cst_79 [2] : vector<2x8x8xf32> to vector<2x8xf32>
    %232 = vector.shape_cast %231 : vector<2x8xf32> to vector<2x8x1xf32>
    %233 = vector.broadcast %232 : vector<2x8x1xf32> to vector<2x8x8xf32>
    %234 = arith.divf %230, %233 : vector<2x8x8xf32>
    "tpu.trace_start"() <{level = 10 : i32, message = "bst,btd->bsd"}> : () -> ()
    %cst_80 = arith.constant dense<0.000000e+00> : vector<2x8x8xf32>
    %235 = tpu.matmul %234, %222, %cst_80 {dimension_numbers = #tpu.dot_dimension_numbers<[2], [1], [1], [2], [0, 0, 0, 1, 1, 2], [0], [0]>} : vector<2x8x8xf32>, vector<2x8x8xf32>, vector<2x8x8xf32> -> vector<2x8x8xf32>
    "tpu.trace_stop"() : () -> ()
    %236 = vector.shape_cast %235 : vector<2x8x8xf32> to vector<16x8xf32>
    %237 = vector.extract_strided_slice %196 {offsets = [0, 16], sizes = [16, 8], strides = [1, 1]} : vector<16x96xf32> to vector<16x8xf32>
    %238 = vector.shape_cast %237 : vector<16x8xf32> to vector<2x8x8xf32>
    %239 = vector.extract_strided_slice %196 {offsets = [0, 48], sizes = [16, 8], strides = [1, 1]} : vector<16x96xf32> to vector<16x8xf32>
    %240 = vector.shape_cast %239 : vector<16x8xf32> to vector<2x8x8xf32>
    %241 = vector.extract_strided_slice %196 {offsets = [0, 80], sizes = [16, 8], strides = [1, 1]} : vector<16x96xf32> to vector<16x8xf32>
    %242 = vector.shape_cast %241 : vector<16x8xf32> to vector<2x8x8xf32>
    "tpu.trace_start"() <{level = 10 : i32, message = "bsd,btd->bst"}> : () -> ()
    %cst_81 = arith.constant dense<0.000000e+00> : vector<2x8x8xf32>
    %243 = tpu.matmul %238, %240, %cst_81 {dimension_numbers = #tpu.dot_dimension_numbers<[2], [2], [1], [1], [0, 0, 0, 1, 1, 1], [0], [0]>} : vector<2x8x8xf32>, vector<2x8x8xf32>, vector<2x8x8xf32> -> vector<2x8x8xf32>
    "tpu.trace_stop"() : () -> ()
    %cst_82 = arith.constant 0.353553385 : f32
    %244 = vector.broadcast %cst_82 : f32 to vector<2x8x8xf32>
    %245 = arith.mulf %243, %244 : vector<2x8x8xf32>
    %cst_83 = arith.constant dense<0xFF800000> : vector<2x8xf32>
    %246 = vector.multi_reduction <maximumf>, %245, %cst_83 [2] : vector<2x8x8xf32> to vector<2x8xf32>
    %247 = vector.shape_cast %246 : vector<2x8xf32> to vector<2x8x1xf32>
    %248 = vector.broadcast %247 : vector<2x8x1xf32> to vector<2x8x8xf32>
    %249 = arith.subf %245, %248 : vector<2x8x8xf32>
    %250 = math.exp %249 : vector<2x8x8xf32>
    %cst_84 = arith.constant dense<0.000000e+00> : vector<2x8xf32>
    %251 = vector.multi_reduction <add>, %250, %cst_84 [2] : vector<2x8x8xf32> to vector<2x8xf32>
    %252 = vector.shape_cast %251 : vector<2x8xf32> to vector<2x8x1xf32>
    %253 = vector.broadcast %252 : vector<2x8x1xf32> to vector<2x8x8xf32>
    %254 = arith.divf %250, %253 : vector<2x8x8xf32>
    "tpu.trace_start"() <{level = 10 : i32, message = "bst,btd->bsd"}> : () -> ()
    %cst_85 = arith.constant dense<0.000000e+00> : vector<2x8x8xf32>
    %255 = tpu.matmul %254, %242, %cst_85 {dimension_numbers = #tpu.dot_dimension_numbers<[2], [1], [1], [2], [0, 0, 0, 1, 1, 2], [0], [0]>} : vector<2x8x8xf32>, vector<2x8x8xf32>, vector<2x8x8xf32> -> vector<2x8x8xf32>
    "tpu.trace_stop"() : () -> ()
    %256 = vector.shape_cast %255 : vector<2x8x8xf32> to vector<16x8xf32>
    %257 = vector.extract_strided_slice %196 {offsets = [0, 24], sizes = [16, 8], strides = [1, 1]} : vector<16x96xf32> to vector<16x8xf32>
    %258 = vector.shape_cast %257 : vector<16x8xf32> to vector<2x8x8xf32>
    %259 = vector.extract_strided_slice %196 {offsets = [0, 56], sizes = [16, 8], strides = [1, 1]} : vector<16x96xf32> to vector<16x8xf32>
    %260 = vector.shape_cast %259 : vector<16x8xf32> to vector<2x8x8xf32>
    %261 = vector.extract_strided_slice %196 {offsets = [0, 88], sizes = [16, 8], strides = [1, 1]} : vector<16x96xf32> to vector<16x8xf32>
    %262 = vector.shape_cast %261 : vector<16x8xf32> to vector<2x8x8xf32>
    "tpu.trace_start"() <{level = 10 : i32, message = "bsd,btd->bst"}> : () -> ()
    %cst_86 = arith.constant dense<0.000000e+00> : vector<2x8x8xf32>
    %263 = tpu.matmul %258, %260, %cst_86 {dimension_numbers = #tpu.dot_dimension_numbers<[2], [2], [1], [1], [0, 0, 0, 1, 1, 1], [0], [0]>} : vector<2x8x8xf32>, vector<2x8x8xf32>, vector<2x8x8xf32> -> vector<2x8x8xf32>
    "tpu.trace_stop"() : () -> ()
    %cst_87 = arith.constant 0.353553385 : f32
    %264 = vector.broadcast %cst_87 : f32 to vector<2x8x8xf32>
    %265 = arith.mulf %263, %264 : vector<2x8x8xf32>
    %cst_88 = arith.constant dense<0xFF800000> : vector<2x8xf32>
    %266 = vector.multi_reduction <maximumf>, %265, %cst_88 [2] : vector<2x8x8xf32> to vector<2x8xf32>
    %267 = vector.shape_cast %266 : vector<2x8xf32> to vector<2x8x1xf32>
    %268 = vector.broadcast %267 : vector<2x8x1xf32> to vector<2x8x8xf32>
    %269 = arith.subf %265, %268 : vector<2x8x8xf32>
    %270 = math.exp %269 : vector<2x8x8xf32>
    %cst_89 = arith.constant dense<0.000000e+00> : vector<2x8xf32>
    %271 = vector.multi_reduction <add>, %270, %cst_89 [2] : vector<2x8x8xf32> to vector<2x8xf32>
    %272 = vector.shape_cast %271 : vector<2x8xf32> to vector<2x8x1xf32>
    %273 = vector.broadcast %272 : vector<2x8x1xf32> to vector<2x8x8xf32>
    %274 = arith.divf %270, %273 : vector<2x8x8xf32>
    "tpu.trace_start"() <{level = 10 : i32, message = "bst,btd->bsd"}> : () -> ()
    %cst_90 = arith.constant dense<0.000000e+00> : vector<2x8x8xf32>
    %275 = tpu.matmul %274, %262, %cst_90 {dimension_numbers = #tpu.dot_dimension_numbers<[2], [1], [1], [2], [0, 0, 0, 1, 1, 2], [0], [0]>} : vector<2x8x8xf32>, vector<2x8x8xf32>, vector<2x8x8xf32> -> vector<2x8x8xf32>
    "tpu.trace_stop"() : () -> ()
    %276 = vector.shape_cast %275 : vector<2x8x8xf32> to vector<16x8xf32>
    %277 = tpu.concatenate %216, %236, %256, %276 in 1 : vector<16x8xf32>, vector<16x8xf32>, vector<16x8xf32>, vector<16x8xf32> -> vector<16x32xf32>
    %c240 = arith.constant 240 : index
    %c0_91 = arith.constant 0 : index
    %278 = vector.load %arg2[%c240, %c0_91] : memref<376x128xf32, #tpu.memory_space<vmem>>, vector<32x32xf32>
    %cst_92 = arith.constant dense<0.000000e+00> : vector<16x32xf32>
    %279 = tpu.matmul %277, %278, %cst_92 {dimension_numbers = #tpu.dot_dimension_numbers<[1], [0], [0], [1], [0, 0, 1, 1], [], []>} : vector<16x32xf32>, vector<32x32xf32>, vector<16x32xf32> -> vector<16x32xf32>
    %c104 = arith.constant 104 : index
    %c0_93 = arith.constant 0 : index
    %280 = vector.load %arg3[%c104, %c0_93] : memref<168x128xf32, #tpu.memory_space<vmem>>, vector<1x32xf32>
    %281 = vector.broadcast %280 : vector<1x32xf32> to vector<16x32xf32>
    %282 = arith.addf %279, %281 : vector<16x32xf32>
    %283 = arith.addf %282, %191 : vector<16x32xf32>
    %c112_94 = arith.constant 112 : index
    %c0_95 = arith.constant 0 : index
    %284 = vector.load %arg3[%c112_94, %c0_95] : memref<168x128xf32, #tpu.memory_space<vmem>>, vector<1x32xf32>
    %c120 = arith.constant 120 : index
    %c0_96 = arith.constant 0 : index
    %285 = vector.load %arg3[%c120, %c0_96] : memref<168x128xf32, #tpu.memory_space<vmem>>, vector<1x32xf32>
    %cst_97 = arith.constant dense<0.000000e+00> : vector<16xf32>
    %286 = vector.multi_reduction <add>, %283, %cst_97 [1] : vector<16x32xf32> to vector<16xf32>
    %287 = vector.shape_cast %286 : vector<16xf32> to vector<16x1xf32>
    %cst_98 = arith.constant 3.200000e+01 : f32
    %288 = vector.broadcast %cst_98 : f32 to vector<16x1xf32>
    %289 = arith.divf %287, %288 : vector<16x1xf32>
    %290 = vector.broadcast %289 : vector<16x1xf32> to vector<16x32xf32>
    %291 = arith.subf %283, %290 : vector<16x32xf32>
    %292 = arith.mulf %291, %291 : vector<16x32xf32>
    %cst_99 = arith.constant dense<0.000000e+00> : vector<16xf32>
    %293 = vector.multi_reduction <add>, %292, %cst_99 [1] : vector<16x32xf32> to vector<16xf32>
    %294 = vector.shape_cast %293 : vector<16xf32> to vector<16x1xf32>
    %cst_100 = arith.constant 3.200000e+01 : f32
    %295 = vector.broadcast %cst_100 : f32 to vector<16x1xf32>
    %296 = arith.divf %294, %295 : vector<16x1xf32>
    %297 = vector.broadcast %289 : vector<16x1xf32> to vector<16x32xf32>
    %298 = arith.subf %283, %297 : vector<16x32xf32>
    %cst_101 = arith.constant 9.99999974E-6 : f32
    %299 = vector.broadcast %cst_101 : f32 to vector<16x1xf32>
    %300 = arith.addf %296, %299 : vector<16x1xf32>
    %301 = math.rsqrt %300 : vector<16x1xf32>
    %302 = vector.broadcast %301 : vector<16x1xf32> to vector<16x32xf32>
    %303 = arith.mulf %298, %302 : vector<16x32xf32>
    %304 = vector.broadcast %284 : vector<1x32xf32> to vector<16x32xf32>
    %305 = arith.mulf %303, %304 : vector<16x32xf32>
    %306 = vector.broadcast %285 : vector<1x32xf32> to vector<16x32xf32>
    %307 = arith.addf %305, %306 : vector<16x32xf32>
    %c272 = arith.constant 272 : index
    %c0_102 = arith.constant 0 : index
    %308 = vector.load %arg2[%c272, %c0_102] : memref<376x128xf32, #tpu.memory_space<vmem>>, vector<32x64xf32>
    %cst_103 = arith.constant dense<0.000000e+00> : vector<16x64xf32>
    %309 = tpu.matmul %307, %308, %cst_103 {dimension_numbers = #tpu.dot_dimension_numbers<[1], [0], [0], [1], [0, 0, 1, 1], [], []>} : vector<16x32xf32>, vector<32x64xf32>, vector<16x64xf32> -> vector<16x64xf32>
    %c128 = arith.constant 128 : index
    %c0_104 = arith.constant 0 : index
    %310 = vector.load %arg3[%c128, %c0_104] : memref<168x128xf32, #tpu.memory_space<vmem>>, vector<1x64xf32>
    %311 = vector.broadcast %310 : vector<1x64xf32> to vector<16x64xf32>
    %312 = arith.addf %309, %311 : vector<16x64xf32>
    %cst_105 = arith.constant 0.000000e+00 : f32
    %313 = vector.broadcast %cst_105 : f32 to vector<16x64xf32>
    %314 = arith.maximumf %312, %313 : vector<16x64xf32>
    %c304 = arith.constant 304 : index
    %c0_106 = arith.constant 0 : index
    %315 = vector.load %arg2[%c304, %c0_106] : memref<376x128xf32, #tpu.memory_space<vmem>>, vector<64x32xf32>
    %cst_107 = arith.constant dense<0.000000e+00> : vector<16x32xf32>
    %316 = tpu.matmul %314, %315, %cst_107 {dimension_numbers = #tpu.dot_dimension_numbers<[1], [0], [0], [1], [0, 0, 1, 1], [], []>} : vector<16x64xf32>, vector<64x32xf32>, vector<16x32xf32> -> vector<16x32xf32>
    %c136 = arith.constant 136 : index
    %c0_108 = arith.constant 0 : index
    %317 = vector.load %arg3[%c136, %c0_108] : memref<168x128xf32, #tpu.memory_space<vmem>>, vector<1x32xf32>
    %318 = vector.broadcast %317 : vector<1x32xf32> to vector<16x32xf32>
    %319 = arith.addf %316, %318 : vector<16x32xf32>
    %320 = arith.addf %319, %307 : vector<16x32xf32>
    %c144_109 = arith.constant 144 : index
    %c0_110 = arith.constant 0 : index
    %321 = vector.load %arg3[%c144_109, %c0_110] : memref<168x128xf32, #tpu.memory_space<vmem>>, vector<1x32xf32>
    %c152 = arith.constant 152 : index
    %c0_111 = arith.constant 0 : index
    %322 = vector.load %arg3[%c152, %c0_111] : memref<168x128xf32, #tpu.memory_space<vmem>>, vector<1x32xf32>
    %cst_112 = arith.constant dense<0.000000e+00> : vector<16xf32>
    %323 = vector.multi_reduction <add>, %320, %cst_112 [1] : vector<16x32xf32> to vector<16xf32>
    %324 = vector.shape_cast %323 : vector<16xf32> to vector<16x1xf32>
    %cst_113 = arith.constant 3.200000e+01 : f32
    %325 = vector.broadcast %cst_113 : f32 to vector<16x1xf32>
    %326 = arith.divf %324, %325 : vector<16x1xf32>
    %327 = vector.broadcast %326 : vector<16x1xf32> to vector<16x32xf32>
    %328 = arith.subf %320, %327 : vector<16x32xf32>
    %329 = arith.mulf %328, %328 : vector<16x32xf32>
    %cst_114 = arith.constant dense<0.000000e+00> : vector<16xf32>
    %330 = vector.multi_reduction <add>, %329, %cst_114 [1] : vector<16x32xf32> to vector<16xf32>
    %331 = vector.shape_cast %330 : vector<16xf32> to vector<16x1xf32>
    %cst_115 = arith.constant 3.200000e+01 : f32
    %332 = vector.broadcast %cst_115 : f32 to vector<16x1xf32>
    %333 = arith.divf %331, %332 : vector<16x1xf32>
    %334 = vector.broadcast %326 : vector<16x1xf32> to vector<16x32xf32>
    %335 = arith.subf %320, %334 : vector<16x32xf32>
    %cst_116 = arith.constant 9.99999974E-6 : f32
    %336 = vector.broadcast %cst_116 : f32 to vector<16x1xf32>
    %337 = arith.addf %333, %336 : vector<16x1xf32>
    %338 = math.rsqrt %337 : vector<16x1xf32>
    %339 = vector.broadcast %338 : vector<16x1xf32> to vector<16x32xf32>
    %340 = arith.mulf %335, %339 : vector<16x32xf32>
    %341 = vector.broadcast %321 : vector<1x32xf32> to vector<16x32xf32>
    %342 = arith.mulf %340, %341 : vector<16x32xf32>
    %343 = vector.broadcast %322 : vector<1x32xf32> to vector<16x32xf32>
    %344 = arith.addf %342, %343 : vector<16x32xf32>
    %345 = vector.shape_cast %344 : vector<16x32xf32> to vector<2x8x32xf32>
    %cst_117 = arith.constant dense<0.000000e+00> : vector<2x8xf32>
    %346 = vector.multi_reduction <add>, %345, %cst_117 [2] : vector<2x8x32xf32> to vector<2x8xf32>
    %cst_118 = arith.constant 3.200000e+01 : f32
    %347 = vector.broadcast %cst_118 : f32 to vector<2x8xf32>
    %348 = arith.divf %346, %347 : vector<2x8xf32>
    %c368 = arith.constant 368 : index
    %c0_119 = arith.constant 0 : index
    %349 = vector.load %arg2[%c368, %c0_119] : memref<376x128xf32, #tpu.memory_space<vmem>>, vector<8x2xf32>
    %cst_120 = arith.constant dense<0.000000e+00> : vector<2x2xf32>
    %350 = tpu.matmul %348, %349, %cst_120 {dimension_numbers = #tpu.dot_dimension_numbers<[1], [0], [0], [1], [0, 0, 1, 1], [], []>} : vector<2x8xf32>, vector<8x2xf32>, vector<2x2xf32> -> vector<2x2xf32>
    %c160 = arith.constant 160 : index
    %c0_121 = arith.constant 0 : index
    %351 = vector.load %arg3[%c160, %c0_121] : memref<168x128xf32, #tpu.memory_space<vmem>>, vector<1x2xf32>
    %352 = vector.broadcast %351 : vector<1x2xf32> to vector<2x2xf32>
    %353 = arith.addf %350, %352 : vector<2x2xf32>
    %cst_122 = arith.constant dense<0xFF800000> : vector<2xf32>
    %354 = vector.multi_reduction <maximumf>, %353, %cst_122 [1] : vector<2x2xf32> to vector<2xf32>
    %355 = vector.shape_cast %354 : vector<2xf32> to vector<2x1xf32>
    %356 = vector.broadcast %355 : vector<2x1xf32> to vector<2x2xf32>
    %357 = arith.subf %353, %356 : vector<2x2xf32>
    %358 = math.exp %357 : vector<2x2xf32>
    %cst_123 = arith.constant dense<0.000000e+00> : vector<2xf32>
    %359 = vector.multi_reduction <add>, %358, %cst_123 [1] : vector<2x2xf32> to vector<2xf32>
    %360 = vector.shape_cast %359 : vector<2xf32> to vector<2x1xf32>
    %361 = vector.broadcast %360 : vector<2x1xf32> to vector<2x2xf32>
    %362 = arith.divf %358, %361 : vector<2x2xf32>
    %c0_124 = arith.constant 0 : index
    %c0_125 = arith.constant 0 : index
    %363 = vector.load %arg4[%c0_124, %c0_125] : memref<2x2xf32, #tpu.memory_space<vmem>>, vector<2x2xf32>
    tpu.vector_store %arg4[%c0_124, %c0_125], %362 {strides = array<i32>} : memref<2x2xf32, #tpu.memory_space<vmem>>, vector<2x2xf32>,
    return
  }
}

</mosaic_0001>

<bundles_post_ra>
// kernel: tpu_custom_call.1
= control target key start
LH: loop header
LB: loop body
LE: loop exit
PB: predicated region body
PF: predicated region fallthrough
CT: control target
= control target key end

     0   :  { %9 = vsyncpa [#allocation3], 0  ;;  %s3024_s0 = inlined_call_operand.hbm [shape: f32[16,16], index: 0, kind: input, shape index: {}]   ;;  %s3025_s1 = inlined_call_operand.hbm [shape: f32[16,32], index: 1, kind: input, shape index: {}]   ;;  %s3026_s2 = inlined_call_operand.hbm [shape: f32[376,128], index: 2, kind: input, shape index: {}]   ;;  %s3027_s3 = inlined_call_operand.hbm [shape: f32[168,128], index: 3, kind: input, shape index: {}]   ;;  %s3028_s4 = inlined_call_operand.hbm [shape: f32[2,2], index: 4, kind: output, shape index: {}]  }
   0x1   :  { %10 = vsyncpa [#allocation6], 0 }
   0x2   :  { %11 = vsyncpa [#allocation9], 0 }
   0x3   :  { %12 = vsyncpa [#allocation4], 0  ;;  %s30_s17 = sshll.u32 %s3025_s1, 4  ;;  %s2489_s18 = smov [#allocation5]   ;;  %s31_s17 = int_to_ptr.hbm [resolvable:$true] %s30_s17 }
   0x4   :  { %s32_s19 = sshll.u32 %s2489_s18, 4  ;;  %s17_s22 = sshll.u32 %s3024_s0, 4  ;;  %s33_s19 = int_to_ptr.vmem [resolvable:$true] %s32_s19  ;;  %s18_s22 = int_to_ptr.hbm [resolvable:$true] %s17_s22 }
   0x5   :  { %s2490_s23 = smov 128   ;;  %s2491_s24 = smov 8  }
   0x6   :  { %38 = dma.hbm_to_vmem [thread:$0]  %s31_s17, 256, %s33_s19, [#allocation6], %s2490_s23, %s2490_s23, %s2491_s24  }
   0x7   :  { %s2492_s25 = smov [#allocation2]   ;;  %s43_s29 = sshll.u32 %s3026_s2, 4  ;;  %s44_s29 = int_to_ptr.hbm [resolvable:$true] %s43_s29 }
   0x8   :  { %s19_s26 = sshll.u32 %s2492_s25, 4  ;;  %s56_s5 = sshll.u32 %s3027_s3, 4  ;;  %s20_s26 = int_to_ptr.vmem [resolvable:$true] %s19_s26  ;;  %s57_s5 = int_to_ptr.hbm [resolvable:$true] %s56_s5 }
   0x9   :  { %25 = dma.hbm_to_vmem [thread:$0]  %s18_s22, 256, %s20_s26, [#allocation3], %s2490_s23, %s2490_s23, %s2491_s24  }
   0xa   :  { %s2493_s0 = smov [#allocation7]   ;;  %s2494_s7 = smov [#allocation8]  }
   0xb   :  { %s45_s6 = sshll.u32 %s2493_s0, 4  ;;  %s58_s8 = sshll.u32 %s2494_s7, 4  ;;  %s46_s6 = int_to_ptr.vmem [resolvable:$true] %s45_s6  ;;  %s59_s8 = int_to_ptr.vmem [resolvable:$true] %s58_s8 }
   0xc   :  { %51 = dma.hbm_to_vmem [thread:$0]  %s44_s29, 6016, %s46_s6, [#allocation6], %s2490_s23, %s2490_s23, %s2491_s24  }
   0xd   :  { %64 = dma.hbm_to_vmem [thread:$0]  %s57_s5, 2688, %s59_s8, [#allocation9], %s2490_s23, %s2490_s23, %s2491_s24  }
   0xe   :  { %2481 = dma.done.wait [#allocation3], 256  }
   0xf   :  { %2482 = vsyncadd [#allocation3], 4294967040 }
  0x10   :  { %2483 = dma.done.wait [#allocation6], 6272  }
  0x11   :  { %2484 = vsyncadd [#allocation6], 4294961024 }
  0x12   :  { %2485 = dma.done.wait [#allocation9], 2688  }
  0x13   :  { %2486 = vsyncadd [#allocation9], 4294964608  ;;  %v84_v0 = vld [vmem:[#allocation7 + $0x8] sm:$0xff]  ;;  %v83_v1 = vld [vmem:[#allocation7] sm:$0xff]  ;;  %vm87_vm0 = vcmask 130048   ;;  %vm125_vm1 = vcmask 261120  }
  0x14   :  { %108 = vmatpush.msra.mxu0 %v84_v0  ;;  %v81_v2 = vld [vmem:[#allocation2] sm:$0xff]  ;;  %v122_v3 = vld [vmem:[#allocation7 + $0x28] sm:$0xff]  ;;  %v120_v6 = vld [vmem:[#allocation7 + $0x18] sm:$0xff]  ;;  %v2495_v22 = vmov 32.0   ;;  %s2496_s2 = smov 96   ;;  %s2497_s3 = smov 120  }
  0x15   :  { %144 = vmatpush.msra.mxu1 %v122_v3  ;;  %v82_v4 = vld [vmem:[#allocation2 + $0x8] sm:$0xff]  ;;  %v121_v5 = vld [vmem:[#allocation7 + $0x20] sm:$0xff]  ;;  %v119_v7 = vld [vmem:[#allocation7 + $0x10] sm:$0xff]  ;;  %2271 = vrcp.f32 %v2495_v22  ;;  %s2498_s9 = smov 88   ;;  %s2499_s10 = smov 112   ;;  %vm256_vm9 = vcmask 64512  }
  0x16   :  { %109 = vmatpush.msra.mxu0 %v83_v1  ;;  %v2250_v8 = vld [vmem:[#allocation8] ss:$0 sm:$0xff]  ;;  %v2251_v15 = vld [vmem:[#allocation8 + $0x8] ss:$0 sm:$0xff]  ;;  %v221_v39 = vld [vmem:[#allocation7 + $0x48] sm:$0xff]  ;;  %s2500_s11 = smov 72  }
  0x17   :  { %2135 = vmatmul.msk.f32.vlgmr.msra.gmra.mxu0 %vm87_vm0, %v81_v2  ;;  %145 = vmatpush.msra.mxu1 %v121_v5  ;;  %v220_v40 = vld [vmem:[#allocation7 + $0x40] sm:$0xff]  ;;  %v219_v41 = vld [vmem:[#allocation7 + $0x38] sm:$0xff]  ;;  %v218_v42 = vld [vmem:[#allocation7 + $0x30] sm:$0xff]  ;;  %s2501_s12 = smov 104   ;;  %s2502_s13 = smov 80  }
  0x18   :  { %242 = vmatpush.msra.mxu2 %v221_v39  ;;  %v2252_v57 = vld [vmem:[#allocation8 + $0x10] ss:$0 sm:$0xff]  ;;  %v2253_v61 = vld [vmem:[#allocation8 + $0x18] ss:$0 sm:$0xff]  ;;  %s2503_s14 = smov 64   ;;  %s2504_s15 = smov 40  }
  0x19   :  { %146 = vmatpush.msra.mxu1 %v120_v6  ;;  %v214_v1 = vld [vmem:[#allocation5] sm:$0xff]  ;;  %s2505_s16 = smov 56   ;;  %s2506_s17 = smov 48  }
  0x1a   :  { %243 = vmatpush.msra.mxu2 %v220_v40  ;;  %s2507_s18 = smov 16   ;;  %s2508_s19 = smov 24  }
  0x1b   :  { %147 = vmatpush.msra.mxu1 %v119_v7  ;;  %v2272_v23 = vpop.eup %2271  ;;  %s2509_s20 = smov [#allocation10]  }
  0x1c   :  { %v164_v24 = vmul.f32 32.0, %v2272_v23  ;;  %vm168_vm2 = vweird.f32 %v2272_v23  ;;  %244 = vmatpush.msra.mxu2 %v219_v41  ;;  %s2121_s21 = sshll.u32 %s2509_s20, 4  ;;  %s2122_s21 = int_to_ptr.vmem [resolvable:$true] %s2121_s21 }
  0x1e   :  { %v165_v25 = vsub.f32 1.0, %v164_v24  ;;  %245 = vmatpush.msra.mxu2 %v218_v42 }
  0x1f   :  { %2136 = vmatmul.msk.f32.gmra.mxu0 %vm87_vm0, %v82_v4 }
  0x20   :  { %v166_v26 = vmul.f32 %v2272_v23, %v165_v25 }
  0x22   :  { %v167_v27 = vadd.f32 %v2272_v23, %v166_v26 }
  0x24   :  { %v2557_v28 = vsel %vm168_vm2, %v2272_v23, %v167_v27 }
  0x94   :  { %v111_v9 = vpop.f32.mrf.mxu0 }
  0x95   :  { %v112_v10 = vadd.f32 %v2250_v8, %v111_v9 }
  0x97   :  { %v117_v11 = vmax.f32 %v112_v10, 0.0 }
  0x99   :  { %2137 = vmatmul.msk.f32.vlgmr.msra.gmra.mxu1 %vm125_vm1, %v117_v11  ;;  %v2254_v11 = vld [vmem:[#allocation8 + $0x20] ss:$0 sm:$0xff] }
  0x9c   :  { %v114_v12 = vpop.f32.mrf.mxu0 }
  0x9d   :  { %v115_v13 = vadd.f32 %v2250_v8, %v114_v12  ;;  %v215_v8 = vld [vmem:[#allocation5 + $0x8] sm:$0xff] }
  0x9f   :  { %v118_v14 = vmax.f32 %v115_v13, 0.0 }
  0xa1   :  { %2138 = vmatmul.msk.f32.gmra.mxu1 %vm125_vm1, %v118_v14 }
 0x116   :  { %v149_v16 = vpop.f32.mrf.mxu1 }
 0x117   :  { %v150_v17 = vadd.f32 %v2251_v15, %v149_v16 }
 0x119   :  { %v157_v18 = vsel %vm125_vm1, %v150_v17, 0.0 }
 0x11a   :  { %158 = vadd.xlane.f32.xlu0 %v157_v18 }
 0x11e   :  { %v152_v19 = vpop.f32.mrf.mxu1 }
 0x11f   :  { %v153_v20 = vadd.f32 %v2251_v15, %v152_v19 }
 0x121   :  { %v160_v21 = vsel %vm125_vm1, %v153_v20, 0.0 }
 0x122   :  { %161 = vadd.xlane.f32.xlu0 %v160_v21 }
 0x18d   :  { %v159_v29 = vpop.xlane.xlu0 %158 }
 0x18e   :  { %v170_v30 = vmul.f32 %v2557_v28, %v159_v29 }
 0x190   :  { %v172_v31 = vsub.f32 %v150_v17, %v170_v30 }
 0x192   :  { %v174_v32 = vmul.f32 %v172_v31, %v172_v31 }
 0x194   :  { %v176_v33 = vsel %vm125_vm1, %v174_v32, 0.0 }
 0x195   :  { %177 = vadd.xlane.f32.xlu1 %v176_v33  ;;  %v162_v34 = vpop.xlane.xlu0 %161 }
 0x196   :  { %v171_v35 = vmul.f32 %v2557_v28, %v162_v34 }
 0x198   :  { %v173_v36 = vsub.f32 %v153_v20, %v171_v35 }
 0x19a   :  { %v175_v37 = vmul.f32 %v173_v36, %v173_v36 }
 0x19c   :  { %v179_v38 = vsel %vm125_vm1, %v175_v37, 0.0 }
 0x19d   :  { %180 = vadd.xlane.f32.xlu1 %v179_v38 }
 0x208   :  { %v178_v43 = vpop.xlane.xlu1 %177 }
 0x209   :  { %v182_v44 = vmul.f32 %v178_v43, %v2557_v28 }
 0x20b   :  { %v184_v45 = vadd.f32 1e-05, %v182_v44 }
 0x20d   :  { %2273 = vrsqrt.f32 %v184_v45  ;;  %vm192_vm4 = vweird.f32 %v184_v45 }
 0x210   :  { %v181_v46 = vpop.xlane.xlu1 %180 }
 0x211   :  { %v183_v47 = vmul.f32 %v181_v46, %v2557_v28 }
 0x213   :  { %v2274_v48 = vpop.eup %2273  ;;  %v185_v49 = vadd.f32 1e-05, %v183_v47 }
 0x214   :  { %v187_v50 = vmul.f32 %v2274_v48, %v184_v45  ;;  %vm193_vm3 = vweird.f32 %v2274_v48 }
 0x215   :  { %2275 = vrsqrt.f32 %v185_v49  ;;  %vm194_vm5 = vmor %vm192_vm4, %vm193_vm3  ;;  %vm202_vm7 = vweird.f32 %v185_v49 }
 0x216   :  { %v188_v51 = vmul.f32 %v2274_v48, %v187_v50 }
 0x218   :  { %v189_v52 = vmul.f32 0.5, %v188_v51 }
 0x21a   :  { %v190_v53 = vsub.f32 1.5, %v189_v52 }
 0x21b   :  { %v2276_v54 = vpop.eup %2275 }
 0x21c   :  { %v191_v55 = vmul.f32 %v2274_v48, %v190_v53  ;;  %v197_v56 = vmul.f32 %v2276_v54, %v185_v49  ;;  %vm203_vm6 = vweird.f32 %v2276_v54 }
 0x21d   :  { %vm204_vm8 = vmor %vm202_vm7, %vm203_vm6 }
 0x21e   :  { %v195_v58 = vsel %vm194_vm5, %v2274_v48, %v191_v55  ;;  %v198_v59 = vmul.f32 %v2276_v54, %v197_v56 }
 0x21f   :  { %v206_v60 = vmul.f32 %v195_v58, %v172_v31 }
 0x220   :  { %v199_v62 = vmul.f32 0.5, %v198_v59 }
 0x221   :  { %v209_v63 = vmul.f32 %v2252_v57, %v206_v60 }
 0x222   :  { %v200_v0 = vsub.f32 1.5, %v199_v62 }
 0x223   :  { %v212_v2 = vadd.f32 %v2253_v61, %v209_v63 }
 0x224   :  { %v201_v3 = vmul.f32 %v2276_v54, %v200_v0 }
 0x225   :  { %v2565_v4 = vadd.f32 %v214_v1, %v212_v2 }
 0x226   :  { %v205_v5 = vsel %vm204_vm8, %v2276_v54, %v201_v3 }
 0x227   :  { %v207_v6 = vmul.f32 %v205_v5, %v173_v36  ;;  %2139 = vmatmul.msk.f32.vlgmr.msra.gmra.mxu2 %vm125_vm1, %v2565_v4 }
 0x229   :  { %v210_v7 = vmul.f32 %v2252_v57, %v207_v6 }
 0x22b   :  { %v213_v9 = vadd.f32 %v2253_v61, %v210_v7 }
 0x22d   :  { %v2569_v10 = vadd.f32 %v215_v8, %v213_v9 }
 0x22f   :  { %2140 = vmatmul.msk.f32.gmra.mxu2 %vm125_vm1, %v2569_v10 }
 0x2aa   :  { %v247_v12 = vpop.f32.mrf.mxu2 }
 0x2ab   :  { %v2573_v13 = vadd.f32 %v2254_v11, %v247_v12 }
 0x2ad   :  { %254 = vrot.lane.b32.xlu2 %v2573_v13, %s2496_s2 }
 0x2b2   :  { %v250_v14 = vpop.f32.mrf.mxu2 }
 0x2b3   :  { %v2577_v15 = vadd.f32 %v2254_v11, %v250_v14 }
 0x2b5   :  { %438 = vrot.lane.b32.xlu1 %v2577_v15, %s2497_s3  ;;  %440 = vrot.lane.b32.xlu0 %v2577_v15, %s2498_s9  ;;  %v2633_v55 = vpack.i.bf16 %v2577_v15, %v2573_v13 }
 0x2b6   :  { %282 = vrot.lane.b32.xlu2 %v2577_v15, %s2496_s2 }
 0x2bd   :  { %568 = vrot.lane.b32.xlu1 %v2573_v13, %s2499_s10  ;;  %596 = vrot.lane.b32.xlu0 %v2577_v15, %s2499_s10 }
 0x2be   :  { %412 = vrot.lane.b32.xlu2 %v2573_v13, %s2498_s9 }
 0x2c5   :  { %728 = vrot.lane.b32.xlu1 %v2573_v13, %s2500_s11  ;;  %756 = vrot.lane.b32.xlu0 %v2577_v15, %s2500_s11 }
 0x2c6   :  { %410 = vrot.lane.b32.xlu2 %v2573_v13, %s2497_s3 }
 0x2cd   :  { %726 = vrot.lane.b32.xlu0 %v2573_v13, %s2501_s12 }
 0x2ce   :  { %598 = vrot.lane.b32.xlu2 %v2577_v15, %s2502_s13 }
 0x2d6   :  { %570 = vrot.lane.b32.xlu2 %v2573_v13, %s2502_s13 }
 0x2de   :  { %754 = vrot.lane.b32.xlu2 %v2577_v15, %s2501_s12 }
 0x307   :  { %v255_v16 = vpop.permute.xlu2 %254 }
 0x308   :  { %2141 = vmatpush.xpose.msk.msrb.mxu1 %vm256_vm9, %v255_v16 }
 0x30b   :  { %2142 = vmatmul.msk.f32.vlgmr.msrb.gmra.mxu1 %vm256_vm9, %v2573_v13 }
 0x310   :  { %v283_v17 = vpop.permute.xlu2 %282 }
 0x311   :  { %2143 = vmatpush.xpose.msk.msra.mxu3 %vm256_vm9, %v283_v17 }
 0x314   :  { %2144 = vmatmul.msk.f32.vlgmr.msra.gmra.mxu3 %vm256_vm9, %v2577_v15 }
 0x318   :  { %v413_v18 = vpop.permute.xlu2 %412 }
 0x319   :  { %2147 = vmatpush.xpose.msk.msra.mxu1 %vm256_vm9, %v413_v18 }
 0x320   :  { %v411_v19 = vpop.permute.xlu2 %410 }
 0x321   :  { %2148 = vmatmul.msk.f32.vlgmr.msra.gmra.mxu1 %vm256_vm9, %v411_v19 }
 0x327   :  { %v439_v20 = vpop.permute.xlu1 %438  ;;  %v441_v21 = vpop.permute.xlu0 %440 }
 0x328   :  { %v599_v22 = vpop.permute.xlu2 %598  ;;  %2149 = vmatpush.xpose.msk.msrb.mxu2 %vm256_vm9, %v441_v21 }
 0x32b   :  { %2150 = vmatmul.msk.f32.vlgmr.msrb.gmra.mxu2 %vm256_vm9, %v439_v20 }
 0x32c   :  { %2155 = vmatpush.xpose.msk.msra.mxu2 %vm256_vm9, %v599_v22 }
 0x32f   :  { %v569_v23 = vpop.permute.xlu1 %568  ;;  %v597_v24 = vpop.permute.xlu0 %596 }
 0x330   :  { %v571_v25 = vpop.permute.xlu2 %570 }
 0x331   :  { %2153 = vmatpush.xpose.msk.msrb.mxu1 %vm256_vm9, %v571_v25 }
 0x333   :  { %2156 = vmatmul.msk.f32.vlgmr.msra.gmra.mxu2 %vm256_vm9, %v597_v24 }
 0x334   :  { %2154 = vmatmul.msk.f32.vlgmr.msrb.gmra.mxu1 %vm256_vm9, %v569_v23 }
 0x337   :  { %v729_v26 = vpop.permute.xlu1 %728  ;;  %v757_v27 = vpop.permute.xlu0 %756 }
 0x338   :  { %2159 = vmatpush.xpose.msk.msra.mxu1 %vm256_vm9, %v729_v26  ;;  %2161 = vmatpush.xpose.msk.msrb.mxu2 %vm256_vm9, %v757_v27  ;;  %v755_v29 = vpop.permute.xlu2 %754 }
 0x33b   :  { %2162 = vmatmul.msk.f32.vlgmr.msrb.gmra.mxu2 %vm256_vm9, %v755_v29 }
 0x33f   :  { %v727_v30 = vpop.permute.xlu0 %726 }
 0x340   :  { %2160 = vmatmul.msk.f32.vlgmr.msra.gmra.mxu1 %vm256_vm9, %v727_v30 }
 0x388   :  { %v278_v31 = vpop.f32.mrf.mxu1 }
 0x389   :  { %v308_v32 = vmul.f32 0.35355338, %v278_v31 }
 0x38b   :  { %v310_v33 = vsel %vm256_vm9, %v308_v32, -inf }
 0x38c   :  { %311 = vmax.xlane.f32.xlu2 %v310_v33 }
 0x397   :  { %v305_v34 = vpop.f32.mrf.mxu3 }
 0x398   :  { %v309_v35 = vmul.f32 0.35355338, %v305_v34 }
 0x39a   :  { %v313_v36 = vsel %vm256_vm9, %v309_v35, -inf }
 0x39b   :  { %314 = vmax.xlane.f32.xlu1 %v313_v36 }
 0x39e   :  { %v435_v37 = vpop.f32.mrf.mxu1 }
 0x39f   :  { %v466_v38 = vmul.f32 0.35355338, %v435_v37 }
 0x3a1   :  { %v468_v39 = vsel %vm256_vm9, %v466_v38, -inf }
 0x3a2   :  { %469 = vmax.xlane.f32.xlu0 %v468_v39 }
 0x3ae   :  { %v463_v40 = vpop.f32.mrf.mxu2 }
 0x3af   :  { %v467_v41 = vmul.f32 0.35355338, %v463_v40 }
 0x3b1   :  { %v593_v42 = vpop.f32.mrf.mxu1  ;;  %v471_v43 = vsel %vm256_vm9, %v467_v41, -inf }
 0x3b2   :  { %v624_v44 = vmul.f32 0.35355338, %v593_v42  ;;  %472 = vmax.xlane.f32.xlu2 %v471_v43 }
 0x3b4   :  { %v626_v45 = vsel %vm256_vm9, %v624_v44, -inf }
 0x3b5   :  { %627 = vmax.xlane.f32.xlu1 %v626_v45 }
 0x3b6   :  { %v621_v46 = vpop.f32.mrf.mxu2 }
 0x3b7   :  { %v625_v47 = vmul.f32 0.35355338, %v621_v46 }
 0x3b9   :  { %v629_v48 = vsel %vm256_vm9, %v625_v47, -inf }
 0x3ba   :  { %630 = vmax.xlane.f32.xlu0 %v629_v48 }
 0x3bd   :  { %v751_v49 = vpop.f32.mrf.mxu1 }
 0x3be   :  { %v782_v50 = vmul.f32 0.35355338, %v751_v49  ;;  %v779_v51 = vpop.f32.mrf.mxu2 }
 0x3bf   :  { %v783_v52 = vmul.f32 0.35355338, %v779_v51 }
 0x3c0   :  { %v784_v53 = vsel %vm256_vm9, %v782_v50, -inf }
 0x3c1   :  { %785 = vmax.xlane.f32.xlu2 %v784_v53  ;;  %v787_v54 = vsel %vm256_vm9, %v783_v52, -inf }
 0x3c2   :  { %788 = vmax.xlane.f32.xlu1 %v787_v54 }
 0x3ce   :  { %2226 = vrot.lane.b32.xlu0 %v2633_v55, %s2503_s14 }
 0x3ff   :  { %v312_v56 = vpop.xlane.xlu2 %311 }
 0x400   :  { %v316_v57 = vsub.f32 %v308_v32, %v312_v56 }
 0x402   :  { %v318_v58 = vmul.f32 1.442695, %v316_v57 }
 0x404   :  { %2277 = vpow2.f32 %v318_v58 }
 0x40a   :  { %v2637_v59 = vpop.eup %2277 }
 0x40b   :  { %v322_v60 = vsel %vm256_vm9, %v2637_v59, 0.0 }
 0x40c   :  { %323 = vadd.xlane.f32.xlu0 %v322_v60 }
 0x40e   :  { %v315_v61 = vpop.xlane.xlu1 %314 }
 0x40f   :  { %v317_v62 = vsub.f32 %v309_v35, %v315_v61 }
 0x411   :  { %v320_v63 = vmul.f32 1.442695, %v317_v62 }
 0x413   :  { %2279 = vpow2.f32 %v320_v63 }
 0x415   :  { %v470_v0 = vpop.xlane.xlu0 %469 }
 0x416   :  { %v474_v1 = vsub.f32 %v466_v38, %v470_v0 }
 0x418   :  { %v476_v2 = vmul.f32 1.442695, %v474_v1 }
 0x419   :  { %v2641_v3 = vpop.eup %2279 }
 0x41a   :  { %2281 = vpow2.f32 %v476_v2  ;;  %v325_v5 = vsel %vm256_vm9, %v2641_v3, 0.0 }
 0x41b   :  { %326 = vadd.xlane.f32.xlu2 %v325_v5 }
 0x420   :  { %v2645_v6 = vpop.eup %2281 }
 0x421   :  { %v480_v7 = vsel %vm256_vm9, %v2645_v6, 0.0 }
 0x422   :  { %481 = vadd.xlane.f32.xlu1 %v480_v7 }
 0x425   :  { %v473_v8 = vpop.xlane.xlu2 %472 }
 0x426   :  { %v475_v9 = vsub.f32 %v467_v41, %v473_v8 }
 0x428   :  { %v478_v11 = vmul.f32 1.442695, %v475_v9  ;;  %v628_v12 = vpop.xlane.xlu1 %627 }
 0x429   :  { %v632_v13 = vsub.f32 %v624_v44, %v628_v12 }
 0x42a   :  { %2283 = vpow2.f32 %v478_v11 }
 0x42b   :  { %v634_v14 = vmul.f32 1.442695, %v632_v13 }
 0x42d   :  { %2285 = vpow2.f32 %v634_v14  ;;  %v631_v15 = vpop.xlane.xlu0 %630 }
 0x42e   :  { %v633_v16 = vsub.f32 %v625_v47, %v631_v15 }
 0x430   :  { %v2649_v17 = vpop.eup %2283  ;;  %v636_v18 = vmul.f32 1.442695, %v633_v16 }
 0x431   :  { %v483_v19 = vsel %vm256_vm9, %v2649_v17, 0.0 }
 0x432   :  { %2287 = vpow2.f32 %v636_v18  ;;  %484 = vadd.xlane.f32.xlu0 %v483_v19 }
 0x433   :  { %v2653_v20 = vpop.eup %2285 }
 0x434   :  { %v638_v21 = vsel %vm256_vm9, %v2653_v20, 0.0  ;;  %v786_v22 = vpop.xlane.xlu2 %785 }
 0x435   :  { %639 = vadd.xlane.f32.xlu2 %v638_v21  ;;  %v790_v23 = vsub.f32 %v782_v50, %v786_v22  ;;  %v789_v24 = vpop.xlane.xlu1 %788 }
 0x436   :  { %v791_v25 = vsub.f32 %v783_v52, %v789_v24 }
 0x437   :  { %v792_v26 = vmul.f32 1.442695, %v790_v23 }
 0x438   :  { %v2657_v27 = vpop.eup %2287  ;;  %v794_v29 = vmul.f32 1.442695, %v791_v25 }
 0x439   :  { %2289 = vpow2.f32 %v792_v26  ;;  %v641_v30 = vsel %vm256_vm9, %v2657_v27, 0.0 }
 0x43a   :  { %2291 = vpow2.f32 %v794_v29  ;;  %642 = vadd.xlane.f32.xlu1 %v641_v30 }
 0x43f   :  { %v2661_v31 = vpop.eup %2289 }
 0x440   :  { %v2663_v32 = vpop.eup %2291  ;;  %v2227_v33 = vpop.permute.xlu0 %2226  ;;  %v796_v34 = vsel %vm256_vm9, %v2661_v31, 0.0 }
 0x441   :  { %797 = vadd.xlane.f32.xlu2 %v796_v34  ;;  %v799_v35 = vsel %vm256_vm9, %v2663_v32, 0.0  ;;  %v2228_v36 = vunpack.i.l.bf16 %v2227_v33  ;;  %v2229_v37 = vunpack.i.h.bf16 %v2227_v33 }
 0x442   :  { %800 = vadd.xlane.f32.xlu1 %v799_v35 }
 0x443   :  { %379 = vmatpush.msrb.mxu0 %v2228_v36  ;;  %405 = vmatpush.msrb.mxu3 %v2229_v37 }
 0x446   :  { %2241 = vrot.lane.b32.xlu0 %v2633_v55, %s2504_s15 }
 0x459   :  { %2231 = vrot.lane.b32.xlu2 %v2633_v55, %s2505_s16 }
 0x45b   :  { %2236 = vrot.lane.b32.xlu1 %v2633_v55, %s2506_s17 }
 0x47f   :  { %v324_v38 = vpop.xlane.xlu0 %323 }
 0x480   :  { %2293 = vrcp.f32 %v324_v38  ;;  %v339_v43 = vand.u32 2147483648, %v324_v38  ;;  %v337_v44 = vand.u32 2147483647, %v324_v38  ;;  %vm333_vm11 = vweird.f32 %v324_v38 }
 0x482   :  { %v340_v47 = vor.u32 1.1754944e-38, %v339_v43  ;;  %vm338_vm13 = vcmp.eq.f32.partialorder %v337_v44, 8.507059e+37 }
 0x486   :  { %v2294_v39 = vpop.eup %2293 }
 0x487   :  { %v329_v40 = vmul.f32 %v2294_v39, %v324_v38  ;;  %vm334_vm10 = vweird.f32 %v2294_v39 }
 0x488   :  { %vm335_vm12 = vmor %vm333_vm11, %vm334_vm10 }
 0x489   :  { %v330_v41 = vsub.f32 1.0, %v329_v40 }
 0x48b   :  { %v331_v42 = vmul.f32 %v2294_v39, %v330_v41 }
 0x48d   :  { %v332_v45 = vadd.f32 %v2294_v39, %v331_v42 }
 0x48e   :  { %v327_v46 = vpop.xlane.xlu2 %326 }
 0x48f   :  { %2295 = vrcp.f32 %v327_v46  ;;  %v336_v48 = vsel %vm335_vm12, %v2294_v39, %v332_v45  ;;  %v354_v54 = vand.u32 2147483648, %v327_v46  ;;  %v352_v56 = vand.u32 2147483647, %v327_v46 }
 0x490   :  { %v341_v49 = vsel %vm338_vm13, %v340_v47, %v336_v48  ;;  %vm348_vm15 = vweird.f32 %v327_v46 }
 0x491   :  { %v342_v50 = vmul.f32 %v2637_v59, %v341_v49  ;;  %v355_v60 = vor.u32 1.1754944e-38, %v354_v54  ;;  %vm353_vm3 = vcmp.eq.f32.partialorder %v352_v56, 8.507059e+37 }
 0x493   :  { %2145 = vmatmul.msk.f32.vlgmr.msrb.gmra.mxu0 %vm256_vm9, %v342_v50 }
 0x495   :  { %v2296_v51 = vpop.eup %2295  ;;  %v482_v58 = vpop.xlane.xlu1 %481 }
 0x496   :  { %v344_v52 = vmul.f32 %v2296_v51, %v327_v46  ;;  %vm349_vm14 = vweird.f32 %v2296_v51  ;;  %2297 = vrcp.f32 %v482_v58  ;;  %vm491_vm6 = vweird.f32 %v482_v58 }
 0x497   :  { %vm350_vm2 = vmor %vm348_vm15, %vm349_vm14  ;;  %v497_v18 = vand.u32 2147483648, %v482_v58  ;;  %v495_v24 = vand.u32 2147483647, %v482_v58 }
 0x498   :  { %v345_v53 = vsub.f32 1.0, %v344_v52 }
 0x499   :  { %v498_v30 = vor.u32 1.1754944e-38, %v497_v18  ;;  %vm496_vm11 = vcmp.eq.f32.partialorder %v495_v24, 8.507059e+37 }
 0x49a   :  { %v346_v55 = vmul.f32 %v2296_v51, %v345_v53 }
 0x49c   :  { %v347_v57 = vadd.f32 %v2296_v51, %v346_v55  ;;  %v2298_v63 = vpop.eup %2297 }
 0x49d   :  { %v487_v1 = vmul.f32 %v2298_v63, %v482_v58  ;;  %vm492_vm4 = vweird.f32 %v2298_v63 }
 0x49e   :  { %v351_v61 = vsel %vm350_vm2, %v2296_v51, %v347_v57  ;;  %vm2691_vm7 = vmor %vm491_vm6, %vm492_vm4 }
 0x49f   :  { %v356_v62 = vsel %vm353_vm3, %v355_v60, %v351_v61  ;;  %v488_v5 = vsub.f32 1.0, %v487_v1 }
 0x4a0   :  { %v357_v59 = vmul.f32 %v2641_v3, %v356_v62 }
 0x4a1   :  { %v489_v12 = vmul.f32 %v2298_v63, %v488_v5 }
 0x4a2   :  { %2146 = vmatmul.msk.f32.vlgmr.msrb.gmra.mxu3 %vm256_vm9, %v357_v59 }
 0x4a3   :  { %v490_v13 = vadd.f32 %v2298_v63, %v489_v12 }
 0x4a5   :  { %v485_v0 = vpop.xlane.xlu0 %484  ;;  %v494_v26 = vsel %vm2691_vm7, %v2298_v63, %v490_v13 }
 0x4a6   :  { %2299 = vrcp.f32 %v485_v0  ;;  %v512_v19 = vand.u32 2147483648, %v485_v0  ;;  %vm506_vm8 = vweird.f32 %v485_v0  ;;  %v510_v25 = vand.u32 2147483647, %v485_v0 }
 0x4a7   :  { %v499_v36 = vsel %vm496_vm11, %v498_v30, %v494_v26 }
 0x4a8   :  { %v2679_v7 = vpop.xlane.xlu2 %639  ;;  %v513_v33 = vor.u32 1.1754944e-38, %v512_v19  ;;  %vm511_vm12 = vcmp.eq.f32.partialorder %v510_v25, 8.507059e+37  ;;  %v500_v45 = vmul.f32 %v2645_v6, %v499_v36  ;;  %v1046_v19 = vld [vmem:[#allocation7 + $0xb8] sm:$0xff] }
 0x4a9   :  { %2301 = vrcp.f32 %v2679_v7  ;;  %vm649_vm15 = vweird.f32 %v2679_v7  ;;  %v655_v53 = vand.u32 2147483648, %v2679_v7  ;;  %v653_v55 = vand.u32 2147483647, %v2679_v7 }
 0x4ab   :  { %v656_v62 = vor.u32 1.1754944e-38, %v655_v53 }
 0x4ac   :  { %v2300_v2 = vpop.eup %2299 }
 0x4ad   :  { %v502_v8 = vmul.f32 %v2300_v2, %v485_v0  ;;  %v2681_v9 = vpop.xlane.xlu1 %642  ;;  %vm507_vm5 = vweird.f32 %v2300_v2 }
 0x4ae   :  { %2303 = vrcp.f32 %v2681_v9  ;;  %vm508_vm10 = vmor %vm506_vm8, %vm507_vm5  ;;  %v670_v54 = vand.u32 2147483648, %v2681_v9  ;;  %vm664_vm3 = vweird.f32 %v2681_v9  ;;  %v668_v56 = vand.u32 2147483647, %v2681_v9 }
 0x4af   :  { %v503_v11 = vsub.f32 1.0, %v502_v8  ;;  %v2687_v16 = vpop.eup %2301  ;;  %vm654_vm5 = vcmp.eq.f32.partialorder %v653_v55, 8.507059e+37 }
 0x4b0   :  { %v645_v34 = vmul.f32 %v2687_v16, %v2679_v7  ;;  %vm650_vm13 = vweird.f32 %v2687_v16  ;;  %v671_v59 = vor.u32 1.1754944e-38, %v670_v54  ;;  %vm669_vm6 = vcmp.eq.f32.partialorder %v668_v56, 8.507059e+37 }
 0x4b1   :  { %v504_v3 = vmul.f32 %v2300_v2, %v503_v11  ;;  %vm651_vm2 = vmor %vm649_vm15, %vm650_vm13 }
 0x4b2   :  { %v646_v40 = vsub.f32 1.0, %v645_v34 }
 0x4b3   :  { %v505_v14 = vadd.f32 %v2300_v2, %v504_v3 }
 0x4b4   :  { %v2685_v15 = vpop.xlane.xlu2 %797  ;;  %v2304_v22 = vpop.eup %2303  ;;  %v647_v47 = vmul.f32 %v2687_v16, %v646_v40  ;;  %v916_v40 = vld [vmem:[#allocation7 + $0x58] sm:$0xff] }
 0x4b5   :  { %v2689_v21 = vpop.xlane.xlu1 %800  ;;  %2305 = vrcp.f32 %v2685_v15  ;;  %v509_v29 = vsel %vm508_vm10, %v2300_v2, %v505_v14  ;;  %v660_v35 = vmul.f32 %v2304_v22, %v2681_v9  ;;  %vm665_vm14 = vweird.f32 %v2304_v22 }
 0x4b6   :  { %2307 = vrcp.f32 %v2689_v21  ;;  %v514_v37 = vsel %vm511_vm12, %v513_v33, %v509_v29  ;;  %v648_v6 = vadd.f32 %v2687_v16, %v647_v47  ;;  %vm666_vm4 = vmor %vm664_vm3, %vm665_vm14  ;;  %vm807_vm7 = vweird.f32 %v2685_v15 }
 0x4b7   :  { %v661_v41 = vsub.f32 1.0, %v660_v35  ;;  %v515_v46 = vmul.f32 %v2649_v17, %v514_v37  ;;  %v811_v2 = vand.u32 2147483647, %v2685_v15  ;;  %v813_v9 = vand.u32 2147483648, %v2685_v15 }
 0x4b8   :  { %v652_v57 = vsel %vm651_vm2, %v2687_v16, %v648_v6  ;;  %v2242_v7 = vpop.permute.xlu0 %2241  ;;  %v828_v11 = vand.u32 2147483648, %v2689_v21  ;;  %vm822_vm12 = vweird.f32 %v2689_v21  ;;  %v826_v14 = vand.u32 2147483647, %v2689_v21 }
 0x4b9   :  { %v662_v48 = vmul.f32 %v2304_v22, %v661_v41  ;;  %v657_v63 = vsel %vm654_vm5, %v656_v62, %v652_v57  ;;  %vm812_vm14 = vcmp.eq.f32.partialorder %v811_v2, 8.507059e+37  ;;  %v915_v41 = vld [vmem:[#allocation7 + $0x50] sm:$0xff]  ;;  %vm912_vm2 = vcmask 195584  }
 0x4ba   :  { %v658_v16 = vmul.f32 %v2653_v20, %v657_v63  ;;  %v814_v20 = vor.u32 1.1754944e-38, %v813_v9  ;;  %vm827_vm15 = vcmp.eq.f32.partialorder %v826_v14, 8.507059e+37  ;;  %v1006_v9 = vld [vmem:[#allocation7 + $0x80] sm:$0xff] }
 0x4bb   :  { %v2702_v39 = vpop.eup %2305  ;;  %v663_v17 = vadd.f32 %v2304_v22, %v662_v48 }
 0x4bc   :  { %v2232_v38 = vpop.permute.xlu2 %2231  ;;  %v2704_v44 = vpop.eup %2307  ;;  %v803_v49 = vmul.f32 %v2702_v39, %v2685_v15  ;;  %vm808_vm8 = vweird.f32 %v2702_v39  ;;  %v2244_v15 = vunpack.i.h.bf16 %v2242_v7 }
 0x4bd   :  { %v2234_v42 = vunpack.i.h.bf16 %v2232_v38  ;;  %v2233_v43 = vunpack.i.l.bf16 %v2232_v38  ;;  %v818_v50 = vmul.f32 %v2704_v44, %v2689_v21  ;;  %v667_v58 = vsel %vm666_vm4, %v2304_v22, %v663_v17  ;;  %vm2734_vm11 = vmor %vm807_vm7, %vm808_vm8  ;;  %v918_v38 = vld [vmem:[#allocation7 + $0x68] sm:$0xff] }
 0x4be   :  { %v804_v51 = vsub.f32 1.0, %v803_v49  ;;  %v672_v0 = vsel %vm669_vm6, %v671_v59, %v667_v58  ;;  %vm823_vm10 = vweird.f32 %v2704_v44  ;;  %v2243_v22 = vunpack.i.l.bf16 %v2242_v7  ;;  %939 = vmatpush.msrb.mxu1 %v918_v38 }
 0x4bf   :  { %537 = vmatpush.msra.mxu0 %v2233_v43  ;;  %563 = vmatpush.msra.mxu3 %v2234_v42  ;;  %v819_v52 = vsub.f32 1.0, %v818_v50  ;;  %v673_v18 = vmul.f32 %v2657_v27, %v672_v0  ;;  %vm2742_vm13 = vmor %vm822_vm12, %vm823_vm10  ;;  %v829_v27 = vor.u32 1.1754944e-38, %v828_v11  ;;  %v1005_v11 = vld [vmem:[#allocation7 + $0x78] sm:$0xff]  ;;  %vm1051_vm10 = vcmask 523264  }
 0x4c0   :  { %2151 = vmatmul.msk.f32.vlgmr.msra.gmra.mxu0 %vm256_vm9, %v500_v45  ;;  %2152 = vmatmul.msk.f32.vlgmr.msra.gmra.mxu3 %vm256_vm9, %v515_v46  ;;  %v805_v60 = vmul.f32 %v2702_v39, %v804_v51 }
 0x4c1   :  { %v820_v61 = vmul.f32 %v2704_v44, %v819_v52  ;;  %v2255_v52 = vld [vmem:[#allocation8 + $0x28] ss:$0 sm:$0xff] }
 0x4c2   :  { %v806_v1 = vadd.f32 %v2702_v39, %v805_v60 }
 0x4c3   :  { %v821_v5 = vadd.f32 %v2704_v44, %v820_v61 }
 0x4c4   :  { %v810_v23 = vsel %vm2734_vm11, %v2702_v39, %v806_v1  ;;  %v917_v39 = vld [vmem:[#allocation7 + $0x60] sm:$0xff] }
 0x4c5   :  { %v825_v21 = vsel %vm2742_vm13, %v2704_v44, %v821_v5  ;;  %v815_v24 = vsel %vm812_vm14, %v814_v20, %v810_v23  ;;  %940 = vmatpush.msrb.mxu1 %v917_v39  ;;  %v1045_v23 = vld [vmem:[#allocation7 + $0xb0] sm:$0xff] }
 0x4c6   :  { %v830_v25 = vsel %vm827_vm15, %v829_v27, %v825_v21  ;;  %v816_v26 = vmul.f32 %v2661_v31, %v815_v24  ;;  %v1044_v27 = vld [vmem:[#allocation7 + $0xa8] sm:$0xff] }
 0x4c7   :  { %v831_v29 = vmul.f32 %v2663_v32, %v830_v25  ;;  %941 = vmatpush.msrb.mxu1 %v916_v40 }
 0x4c9   :  { %942 = vmatpush.msrb.mxu1 %v915_v41 }
 0x4cd   :  { %v2237_v8 = vpop.permute.xlu1 %2236 }
 0x4ce   :  { %v2239_v12 = vunpack.i.h.bf16 %v2237_v8  ;;  %v2238_v3 = vunpack.i.l.bf16 %v2237_v8 }
 0x4d0   :  { %695 = vmatpush.msrb.mxu0 %v2238_v3  ;;  %721 = vmatpush.msrb.mxu3 %v2239_v12  ;;  %v1004_v12 = vld [vmem:[#allocation7 + $0x70] sm:$0xff] }
 0x4d1   :  { %2157 = vmatmul.msk.f32.vlgmr.msrb.gmra.mxu0 %vm256_vm9, %v658_v16  ;;  %2158 = vmatmul.msk.f32.vlgmr.msrb.gmra.mxu3 %vm256_vm9, %v673_v18  ;;  %v1048_v16 = vld [vmem:[#allocation7 + $0xc8] sm:$0xff]  ;;  %v1047_v18 = vld [vmem:[#allocation7 + $0xc0] sm:$0xff] }
 0x4d2   :  { %853 = vmatpush.msra.mxu0 %v2243_v22  ;;  %879 = vmatpush.msra.mxu3 %v2244_v15 }
 0x4d4   :  { %1066 = vmatpush.msrb.mxu0 %v1048_v16 }
 0x4d6   :  { %1067 = vmatpush.msrb.mxu0 %v1047_v18 }
 0x4d8   :  { %1068 = vmatpush.msrb.mxu0 %v1046_v19 }
 0x4d9   :  { %2163 = vmatmul.msk.f32.vlgmr.msra.gmra.mxu0 %vm256_vm9, %v816_v26  ;;  %2164 = vmatmul.msk.f32.vlgmr.msra.gmra.mxu3 %vm256_vm9, %v831_v29 }
 0x4da   :  { %1069 = vmatpush.msrb.mxu0 %v1045_v23 }
 0x4dc   :  { %1070 = vmatpush.msrb.mxu0 %v1044_v27 }
 0x510   :  { %v381_v30 = vpop.f32.mrf.mxu0 }
 0x525   :  { %v407_v33 = vpop.f32.mrf.mxu3 }
 0x53d   :  { %v539_v34 = vpop.f32.mrf.mxu0 }
 0x53e   :  { %886 = vrot.lane.b32.xlu0 %v539_v34, %s2491_s24 }
 0x543   :  { %v565_v35 = vpop.f32.mrf.mxu3 }
 0x544   :  { %888 = vrot.lane.b32.xlu1 %v565_v35, %s2491_s24  ;;  %v2256_v35 = vld [vmem:[#allocation8 + $0x30] ss:$0 sm:$0xff] }
 0x54e   :  { %v697_v36 = vpop.f32.mrf.mxu0 }
 0x54f   :  { %894 = vrot.lane.b32.xlu2 %v697_v36, %s2507_s18 }
 0x554   :  { %v723_v37 = vpop.f32.mrf.mxu3 }
 0x556   :  { %v855_v31 = vpop.f32.mrf.mxu0 }
 0x557   :  { %896 = vrot.lane.b32.xlu2 %v723_v37, %s2507_s18  ;;  %902 = vrot.lane.b32.xlu0 %v855_v31, %s2508_s19 }
 0x55c   :  { %v881_v32 = vpop.f32.mrf.mxu3 }
 0x55f   :  { %904 = vrot.lane.b32.xlu0 %v881_v32, %s2508_s19  ;;  %v2257_v32 = vld [vmem:[#allocation8 + $0x38] ss:$0 sm:$0xff] }
 0x5a9   :  { %v895_v43 = vpop.permute.xlu2 %894 }
 0x5b0   :  { %v887_v42 = vpop.permute.xlu0 %886 }
 0x5b1   :  { %v908_v44 = vsel %vm256_vm9, %v381_v30, %v887_v42  ;;  %v897_v50 = vpop.permute.xlu2 %896 }
 0x5b2   :  { %v910_v45 = vsel %vm87_vm0, %v908_v44, %v895_v43 }
 0x5b6   :  { %v889_v48 = vpop.permute.xlu1 %888 }
 0x5b7   :  { %v909_v49 = vsel %vm256_vm9, %v407_v33, %v889_v48  ;;  %v1042_v48 = vld [vmem:[#allocation7 + $0x98] sm:$0xff] }
 0x5b8   :  { %v911_v17 = vsel %vm87_vm0, %v909_v49, %v897_v50  ;;  %v1041_v49 = vld [vmem:[#allocation7 + $0x90] sm:$0xff]  ;;  %v2258_v50 = vld [vmem:[#allocation8 + $0x40] ss:$0 sm:$0xff] }
 0x5c9   :  { %v903_v46 = vpop.permute.xlu0 %902 }
 0x5ca   :  { %v913_v47 = vsel %vm912_vm2, %v910_v45, %v903_v46 }
 0x5cb   :  { %2165 = vmatmul.msk.f32.vlgmr.msrb.gmra.mxu1 %vm125_vm1, %v913_v47  ;;  %v1043_v47 = vld [vmem:[#allocation7 + $0xa0] sm:$0xff] }
 0x5cc   :  { %1071 = vmatpush.msrb.mxu0 %v1043_v47 }
 0x5ce   :  { %1072 = vmatpush.msrb.mxu0 %v1042_v48 }
 0x5d0   :  { %1073 = vmatpush.msrb.mxu0 %v1041_v49 }
 0x5d1   :  { %v905_v6 = vpop.permute.xlu0 %904 }
 0x5d2   :  { %v914_v51 = vsel %vm912_vm2, %v911_v17, %v905_v6 }
 0x5d3   :  { %2166 = vmatmul.msk.f32.gmra.mxu1 %vm125_vm1, %v914_v51 }
 0x648   :  { %v944_v53 = vpop.f32.mrf.mxu1 }
 0x649   :  { %v945_v54 = vadd.f32 %v2255_v52, %v944_v53 }
 0x64b   :  { %v950_v55 = vadd.f32 %v945_v54, %v2565_v4 }
 0x64d   :  { %v954_v56 = vsel %vm125_vm1, %v950_v55, 0.0 }
 0x64e   :  { %955 = vadd.xlane.f32.xlu1 %v954_v56 }
 0x650   :  { %v947_v57 = vpop.f32.mrf.mxu1 }
 0x651   :  { %v948_v58 = vadd.f32 %v2255_v52, %v947_v57 }
 0x653   :  { %v951_v60 = vadd.f32 %v948_v58, %v2569_v10  ;;  %v1007_v10 = vld [vmem:[#allocation7 + $0x88] sm:$0xff] }
 0x654   :  { %1028 = vmatpush.msra.mxu2 %v1007_v10 }
 0x655   :  { %v957_v61 = vsel %vm125_vm1, %v951_v60, 0.0 }
 0x656   :  { %958 = vadd.xlane.f32.xlu2 %v957_v61  ;;  %1029 = vmatpush.msra.mxu2 %v1006_v9 }
 0x658   :  { %1030 = vmatpush.msra.mxu2 %v1005_v11 }
 0x65a   :  { %1031 = vmatpush.msra.mxu2 %v1004_v12  ;;  %v1138_v12 = vld [vmem:[#allocation7 + $0xe8] sm:$0xff] }
 0x65b   :  { %1159 = vmatpush.msrb.mxu3 %v1138_v12 }
 0x6c1   :  { %v956_v62 = vpop.xlane.xlu1 %955 }
 0x6c2   :  { %v960_v59 = vmul.f32 %v956_v62, %v2557_v28 }
 0x6c4   :  { %v962_v63 = vsub.f32 %v950_v55, %v960_v59  ;;  %v2259_v55 = vld [vmem:[#allocation8 + $0x48] ss:$0 sm:$0xff] }
 0x6c6   :  { %v964_v0 = vmul.f32 %v962_v63, %v962_v63 }
 0x6c8   :  { %v966_v1 = vsel %vm125_vm1, %v964_v0, 0.0 }
 0x6c9   :  { %967 = vadd.xlane.f32.xlu0 %v966_v1  ;;  %v959_v2 = vpop.xlane.xlu2 %958 }
 0x6ca   :  { %v961_v4 = vmul.f32 %v959_v2, %v2557_v28 }
 0x6cc   :  { %v963_v5 = vsub.f32 %v951_v60, %v961_v4 }
 0x6ce   :  { %v965_v7 = vmul.f32 %v963_v5, %v963_v5 }
 0x6d0   :  { %v969_v8 = vsel %vm125_vm1, %v965_v7, 0.0 }
 0x6d1   :  { %970 = vadd.xlane.f32.xlu1 %v969_v8 }
 0x73c   :  { %v968_v3 = vpop.xlane.xlu0 %967 }
 0x73d   :  { %v972_v13 = vmul.f32 %v968_v3, %v2557_v28  ;;  %v1137_v3 = vld [vmem:[#allocation7 + $0xe0] sm:$0xff] }
 0x73e   :  { %1160 = vmatpush.msrb.mxu3 %v1137_v3 }
 0x73f   :  { %v974_v14 = vadd.f32 1e-05, %v972_v13  ;;  %v1136_v13 = vld [vmem:[#allocation7 + $0xd8] sm:$0xff] }
 0x740   :  { %1161 = vmatpush.msrb.mxu3 %v1136_v13 }
 0x741   :  { %2309 = vrsqrt.f32 %v974_v14  ;;  %vm982_vm4 = vweird.f32 %v974_v14 }
 0x744   :  { %v971_v15 = vpop.xlane.xlu1 %970 }
 0x745   :  { %v973_v22 = vmul.f32 %v971_v15, %v2557_v28 }
 0x747   :  { %v2310_v21 = vpop.eup %2309  ;;  %v975_v20 = vadd.f32 1e-05, %v973_v22 }
 0x748   :  { %v977_v24 = vmul.f32 %v2310_v21, %v974_v14  ;;  %vm983_vm3 = vweird.f32 %v2310_v21  ;;  %v1135_v14 = vld [vmem:[#allocation7 + $0xd0] sm:$0xff] }
 0x749   :  { %2311 = vrsqrt.f32 %v975_v20  ;;  %vm984_vm5 = vmor %vm982_vm4, %vm983_vm3  ;;  %vm992_vm7 = vweird.f32 %v975_v20  ;;  %1162 = vmatpush.msrb.mxu3 %v1135_v14 }
 0x74a   :  { %v978_v25 = vmul.f32 %v2310_v21, %v977_v24 }
 0x74c   :  { %v979_v26 = vmul.f32 0.5, %v978_v25 }
 0x74e   :  { %v980_v29 = vsub.f32 1.5, %v979_v26 }
 0x74f   :  { %v2312_v30 = vpop.eup %2311 }
 0x750   :  { %v981_v33 = vmul.f32 %v2310_v21, %v980_v29  ;;  %v987_v34 = vmul.f32 %v2312_v30, %v975_v20  ;;  %vm993_vm6 = vweird.f32 %v2312_v30 }
 0x751   :  { %vm994_vm8 = vmor %vm992_vm7, %vm993_vm6 }
 0x752   :  { %v985_v36 = vsel %vm984_vm5, %v2310_v21, %v981_v33  ;;  %v988_v37 = vmul.f32 %v2312_v30, %v987_v34  ;;  %v2260_v33 = vld [vmem:[#allocation8 + $0x50] ss:$0 sm:$0xff] }
 0x753   :  { %v996_v31 = vmul.f32 %v985_v36, %v962_v63 }
 0x754   :  { %v989_v38 = vmul.f32 0.5, %v988_v37  ;;  %v2261_v37 = vld [vmem:[#allocation8 + $0x58] ss:$0 sm:$0xff] }
 0x755   :  { %v999_v39 = vmul.f32 %v2256_v35, %v996_v31 }
 0x756   :  { %v990_v40 = vsub.f32 1.5, %v989_v38 }
 0x757   :  { %v1002_v41 = vadd.f32 %v2257_v32, %v999_v39 }
 0x758   :  { %v991_v42 = vmul.f32 %v2312_v30, %v990_v40 }
 0x759   :  { %2167 = vmatmul.msk.f32.vlgmr.msra.gmra.mxu2 %vm125_vm1, %v1002_v41 }
 0x75a   :  { %v995_v43 = vsel %vm994_vm8, %v2312_v30, %v991_v42 }
 0x75b   :  { %v997_v44 = vmul.f32 %v995_v43, %v963_v5 }
 0x75d   :  { %v1000_v45 = vmul.f32 %v2256_v35, %v997_v44 }
 0x75f   :  { %v1003_v46 = vadd.f32 %v2257_v32, %v1000_v45  ;;  %v2262_v45 = vld [vmem:[#allocation8 + $0x60] ss:$0 sm:$0xff] }
 0x761   :  { %2168 = vmatmul.msk.f32.gmra.mxu2 %vm125_vm1, %v1003_v46 }
 0x7dc   :  { %v1033_v6 = vpop.f32.mrf.mxu2 }
 0x7dd   :  { %v1034_v17 = vadd.f32 %v2258_v50, %v1033_v6 }
 0x7df   :  { %v1039_v51 = vmax.f32 %v1034_v17, 0.0 }
 0x7e1   :  { %2169 = vmatmul.msk.f32.vlgmr.msrb.gmra.mxu0 %vm1051_vm10, %v1039_v51 }
 0x7e4   :  { %v1036_v52 = vpop.f32.mrf.mxu2 }
 0x7e5   :  { %v1037_v53 = vadd.f32 %v2258_v50, %v1036_v52 }
 0x7e7   :  { %v1040_v54 = vmax.f32 %v1037_v53, 0.0 }
 0x7e9   :  { %2170 = vmatmul.msk.f32.gmra.mxu0 %vm1051_vm10, %v1040_v54 }
 0x85e   :  { %v1075_v56 = vpop.f32.mrf.mxu0 }
 0x85f   :  { %v1076_v57 = vadd.f32 %v2259_v55, %v1075_v56 }
 0x861   :  { %v1081_v58 = vadd.f32 %v1076_v57, %v1002_v41 }
 0x863   :  { %v1085_v60 = vsel %vm125_vm1, %v1081_v58, 0.0 }
 0x864   :  { %1086 = vadd.xlane.f32.xlu2 %v1085_v60 }
 0x866   :  { %v1078_v61 = vpop.f32.mrf.mxu0 }
 0x867   :  { %v1079_v62 = vadd.f32 %v2259_v55, %v1078_v61 }
 0x869   :  { %v1082_v59 = vadd.f32 %v1079_v62, %v1003_v46 }
 0x86b   :  { %v1088_v63 = vsel %vm125_vm1, %v1082_v59, 0.0 }
 0x86c   :  { %1089 = vadd.xlane.f32.xlu0 %v1088_v63 }
 0x8d7   :  { %v1087_v0 = vpop.xlane.xlu2 %1086 }
 0x8d8   :  { %v1091_v1 = vmul.f32 %v1087_v0, %v2557_v28 }
 0x8da   :  { %v1093_v2 = vsub.f32 %v1081_v58, %v1091_v1 }
 0x8dc   :  { %v1095_v4 = vmul.f32 %v1093_v2, %v1093_v2 }
 0x8de   :  { %v1097_v5 = vsel %vm125_vm1, %v1095_v4, 0.0 }
 0x8df   :  { %v1090_v7 = vpop.xlane.xlu0 %1089  ;;  %1098 = vadd.xlane.f32.xlu1 %v1097_v5 }
 0x8e0   :  { %v1092_v8 = vmul.f32 %v1090_v7, %v2557_v28 }
 0x8e2   :  { %v1094_v10 = vsub.f32 %v1082_v59, %v1092_v8 }
 0x8e4   :  { %v1096_v9 = vmul.f32 %v1094_v10, %v1094_v10 }
 0x8e6   :  { %v1100_v11 = vsel %vm125_vm1, %v1096_v9, 0.0 }
 0x8e7   :  { %1101 = vadd.xlane.f32.xlu2 %v1100_v11 }
 0x952   :  { %v1099_v16 = vpop.xlane.xlu1 %1098 }
 0x953   :  { %v1103_v18 = vmul.f32 %v1099_v16, %v2557_v28 }
 0x955   :  { %v1105_v19 = vadd.f32 1e-05, %v1103_v18 }
 0x957   :  { %2313 = vrsqrt.f32 %v1105_v19  ;;  %vm1113_vm12 = vweird.f32 %v1105_v19 }
 0x95a   :  { %v1102_v15 = vpop.xlane.xlu2 %1101 }
 0x95b   :  { %v1104_v22 = vmul.f32 %v1102_v15, %v2557_v28 }
 0x95d   :  { %v2314_v23 = vpop.eup %2313  ;;  %v1106_v21 = vadd.f32 1e-05, %v1104_v22 }
 0x95e   :  { %v1108_v20 = vmul.f32 %v2314_v23, %v1105_v19  ;;  %vm1114_vm11 = vweird.f32 %v2314_v23 }
 0x95f   :  { %2315 = vrsqrt.f32 %v1106_v21  ;;  %vm1115_vm13 = vmor %vm1113_vm12, %vm1114_vm11  ;;  %vm1123_vm15 = vweird.f32 %v1106_v21 }
 0x960   :  { %v1109_v27 = vmul.f32 %v2314_v23, %v1108_v20 }
 0x962   :  { %v1110_v24 = vmul.f32 0.5, %v1109_v27 }
 0x964   :  { %v1111_v25 = vsub.f32 1.5, %v1110_v24 }
 0x965   :  { %v2316_v26 = vpop.eup %2315 }
 0x966   :  { %v1112_v29 = vmul.f32 %v2314_v23, %v1111_v25  ;;  %v1118_v30 = vmul.f32 %v2316_v26, %v1106_v21  ;;  %vm1124_vm14 = vweird.f32 %v2316_v26 }
 0x967   :  { %vm1125_vm3 = vmor %vm1123_vm15, %vm1124_vm14 }
 0x968   :  { %v1116_v34 = vsel %vm1115_vm13, %v2314_v23, %v1112_v29  ;;  %v1119_v35 = vmul.f32 %v2316_v26, %v1118_v30 }
 0x969   :  { %v1127_v36 = vmul.f32 %v1116_v34, %v1093_v2 }
 0x96a   :  { %v1120_v31 = vmul.f32 0.5, %v1119_v35 }
 0x96b   :  { %v1130_v32 = vmul.f32 %v2260_v33, %v1127_v36 }
 0x96c   :  { %v1121_v38 = vsub.f32 1.5, %v1120_v31 }
 0x96d   :  { %v2794_v39 = vadd.f32 %v2261_v37, %v1130_v32 }
 0x96e   :  { %v1122_v40 = vmul.f32 %v2316_v26, %v1121_v38 }
 0x96f   :  { %2171 = vmatmul.msk.f32.vlgmr.msrb.gmra.mxu3 %vm125_vm1, %v2794_v39 }
 0x970   :  { %v1126_v41 = vsel %vm1125_vm3, %v2316_v26, %v1122_v40 }
 0x971   :  { %v1128_v42 = vmul.f32 %v1126_v41, %v1094_v10 }
 0x973   :  { %v1131_v43 = vmul.f32 %v2260_v33, %v1128_v42 }
 0x975   :  { %v2798_v44 = vadd.f32 %v2261_v37, %v1131_v43 }
 0x977   :  { %2172 = vmatmul.msk.f32.gmra.mxu3 %vm125_vm1, %v2798_v44 }
 0x9f2   :  { %v1164_v46 = vpop.f32.mrf.mxu3 }
 0x9f3   :  { %v2802_v47 = vadd.f32 %v2262_v45, %v1164_v46 }
 0x9f5   :  { %1328 = vrot.lane.b32.xlu2 %v2802_v47, %s2498_s9  ;;  %1171 = vrot.lane.b32.xlu1 %v2802_v47, %s2496_s2 }
 0x9fa   :  { %v1167_v48 = vpop.f32.mrf.mxu3 }
 0x9fb   :  { %v2808_v49 = vadd.f32 %v2262_v45, %v1167_v48 }
 0x9fd   :  { %1644 = vrot.lane.b32.xlu2 %v2802_v47, %s2500_s11  ;;  %1486 = vrot.lane.b32.xlu1 %v2802_v47, %s2502_s13  ;;  %v2245_v50 = vpack.i.bf16 %v2808_v49, %v2802_v47 }
 0x9fe   :  { %1198 = vrot.lane.b32.xlu0 %v2808_v49, %s2496_s2 }
 0xa05   :  { %1642 = vrot.lane.b32.xlu1 %v2802_v47, %s2501_s12  ;;  %1354 = vrot.lane.b32.xlu2 %v2808_v49, %s2497_s3 }
 0xa06   :  { %1326 = vrot.lane.b32.xlu0 %v2802_v47, %s2497_s3 }
 0xa0d   :  { %1514 = vrot.lane.b32.xlu1 %v2808_v49, %s2502_s13  ;;  %1672 = vrot.lane.b32.xlu2 %v2808_v49, %s2500_s11 }
 0xa0e   :  { %1484 = vrot.lane.b32.xlu0 %v2802_v47, %s2499_s10 }
 0xa15   :  { %1670 = vrot.lane.b32.xlu1 %v2808_v49, %s2501_s12 }
 0xa16   :  { %1356 = vrot.lane.b32.xlu0 %v2808_v49, %s2498_s9 }
 0xa1e   :  { %1512 = vrot.lane.b32.xlu0 %v2808_v49, %s2499_s10 }
 0xa26   :  { %2246 = vrot.lane.b32.xlu0 %v2245_v50, %s2503_s14 }
 0xa4f   :  { %v1329_v17 = vpop.permute.xlu2 %1328 }
 0xa57   :  { %v1645_v53 = vpop.permute.xlu2 %1644 }
 0xa5f   :  { %v1355_v57 = vpop.permute.xlu2 %1354 }
 0xa67   :  { %v1172_v6 = vpop.permute.xlu1 %1171  ;;  %v1673_v61 = vpop.permute.xlu2 %1672 }
 0xa68   :  { %2173 = vmatpush.xpose.msk.msra.mxu1 %vm256_vm9, %v1172_v6 }
 0xa6b   :  { %2174 = vmatmul.msk.f32.vlgmr.msra.gmra.mxu1 %vm256_vm9, %v2802_v47 }
 0xa6f   :  { %v1487_v52 = vpop.permute.xlu1 %1486 }
 0xa70   :  { %v1199_v51 = vpop.permute.xlu0 %1198 }
 0xa71   :  { %2175 = vmatpush.xpose.msk.msrb.mxu2 %vm256_vm9, %v1199_v51 }
 0xa74   :  { %2176 = vmatmul.msk.f32.vlgmr.msrb.gmra.mxu2 %vm256_vm9, %v2808_v49 }
 0xa75   :  { %2179 = vmatpush.xpose.msk.msra.mxu2 %vm256_vm9, %v1329_v17 }
 0xa77   :  { %v1643_v55 = vpop.permute.xlu1 %1642 }
 0xa78   :  { %v1327_v54 = vpop.permute.xlu0 %1326 }
 0xa79   :  { %2185 = vmatpush.xpose.msk.msrb.mxu2 %vm256_vm9, %v1487_v52 }
 0xa7c   :  { %2180 = vmatmul.msk.f32.vlgmr.msra.gmra.mxu2 %vm256_vm9, %v1327_v54 }
 0xa7d   :  { %2191 = vmatpush.xpose.msk.msra.mxu2 %vm256_vm9, %v1645_v53 }
 0xa7f   :  { %v1515_v60 = vpop.permute.xlu1 %1514 }
 0xa80   :  { %v1485_v56 = vpop.permute.xlu0 %1484 }
 0xa84   :  { %2186 = vmatmul.msk.f32.vlgmr.msrb.gmra.mxu2 %vm256_vm9, %v1485_v56 }
 0xa87   :  { %v1671_v1 = vpop.permute.xlu1 %1670 }
 0xa88   :  { %v1357_v58 = vpop.permute.xlu0 %1356 }
 0xa89   :  { %2181 = vmatpush.xpose.msk.msra.mxu0 %vm256_vm9, %v1357_v58 }
 0xa8c   :  { %2182 = vmatmul.msk.f32.vlgmr.msra.gmra.mxu0 %vm256_vm9, %v1355_v57  ;;  %2192 = vmatmul.msk.f32.vlgmr.msra.gmra.mxu2 %vm256_vm9, %v1643_v55 }
 0xa8d   :  { %2187 = vmatpush.xpose.msk.msrb.mxu0 %vm256_vm9, %v1515_v60 }
 0xa90   :  { %v1513_v62 = vpop.permute.xlu0 %1512 }
 0xa91   :  { %2193 = vmatpush.xpose.msk.msra.mxu0 %vm256_vm9, %v1673_v61 }
 0xa94   :  { %2188 = vmatmul.msk.f32.vlgmr.msrb.gmra.mxu0 %vm256_vm9, %v1513_v62 }
 0xa98   :  { %v2247_v59 = vpop.permute.xlu0 %2246 }
 0xa99   :  { %v2249_v63 = vunpack.i.h.bf16 %v2247_v59  ;;  %v2248_v0 = vunpack.i.l.bf16 %v2247_v59 }
 0xa9b   :  { %1295 = vmatpush.msra.mxu3 %v2248_v0  ;;  %1321 = vmatpush.msrb.mxu1 %v2249_v63 }
 0xa9c   :  { %2194 = vmatmul.msk.f32.vlgmr.msra.gmra.mxu0 %vm256_vm9, %v1671_v1 }
 0xae8   :  { %v1194_v2 = vpop.f32.mrf.mxu1 }
 0xae9   :  { %v1224_v4 = vmul.f32 0.35355338, %v1194_v2 }
 0xaeb   :  { %v1226_v5 = vsel %vm256_vm9, %v1224_v4, -inf }
 0xaec   :  { %1227 = vmax.xlane.f32.xlu0 %v1226_v5 }
 0xaf7   :  { %v1221_v7 = vpop.f32.mrf.mxu2 }
 0xaf8   :  { %v1225_v8 = vmul.f32 0.35355338, %v1221_v7 }
 0xafa   :  { %v1229_v10 = vsel %vm256_vm9, %v1225_v8, -inf }
 0xafb   :  { %1230 = vmax.xlane.f32.xlu1 %v1229_v10 }
 0xaff   :  { %v1351_v9 = vpop.f32.mrf.mxu2 }
 0xb00   :  { %v1382_v16 = vmul.f32 0.35355338, %v1351_v9 }
 0xb02   :  { %v1384_v21 = vsel %vm256_vm9, %v1382_v16, -inf }
 0xb07   :  { %v1509_v11 = vpop.f32.mrf.mxu2 }
 0xb08   :  { %v1540_v20 = vmul.f32 0.35355338, %v1509_v11 }
 0xb09   :  { %v1379_v12 = vpop.f32.mrf.mxu0 }
 0xb0a   :  { %v1383_v3 = vmul.f32 0.35355338, %v1379_v12  ;;  %v1542_v25 = vsel %vm256_vm9, %v1540_v20, -inf }
 0xb0c   :  { %v1387_v13 = vsel %vm256_vm9, %v1383_v3, -inf }
 0xb0d   :  { %1388 = vmax.xlane.f32.xlu2 %v1387_v13 }
 0xb0f   :  { %v1667_v14 = vpop.f32.mrf.mxu2 }
 0xb10   :  { %v2858_v18 = vmul.f32 0.35355338, %v1667_v14 }
 0xb11   :  { %v1537_v19 = vpop.f32.mrf.mxu0 }
 0xb12   :  { %v1541_v15 = vmul.f32 0.35355338, %v1537_v19  ;;  %v1700_v22 = vsel %vm256_vm9, %v2858_v18, -inf }
 0xb13   :  { %1701 = vmax.xlane.f32.xlu1 %v1700_v22 }
 0xb14   :  { %v1545_v23 = vsel %vm256_vm9, %v1541_v15, -inf }
 0xb15   :  { %1546 = vmax.xlane.f32.xlu0 %v1545_v23  ;;  %1385 = vmax.xlane.f32.xlu2 %v1384_v21 }
 0xb19   :  { %v1695_v27 = vpop.f32.mrf.mxu0 }
 0xb1a   :  { %v1699_v24 = vmul.f32 0.35355338, %v1695_v27 }
 0xb1c   :  { %v1703_v26 = vsel %vm256_vm9, %v1699_v24, -inf }
 0xb1d   :  { %1543 = vmax.xlane.f32.xlu0 %v1542_v25  ;;  %1704 = vmax.xlane.f32.xlu2 %v1703_v26 }
 0xb31   :  { %1590 = vrot.lane.b32.xlu0 %v2802_v47, %s2506_s17 }
 0xb35   :  { %1432 = vrot.lane.b32.xlu2 %v2802_v47, %s2505_s16 }
 0xb5f   :  { %v1228_v29 = vpop.xlane.xlu0 %1227 }
 0xb60   :  { %v1232_v30 = vsub.f32 %v1224_v4, %v1228_v29 }
 0xb62   :  { %v1234_v33 = vmul.f32 1.442695, %v1232_v30 }
 0xb64   :  { %2317 = vpow2.f32 %v1234_v33 }
 0xb6a   :  { %v2870_v34 = vpop.eup %2317 }
 0xb6b   :  { %v1238_v35 = vsel %vm256_vm9, %v2870_v34, 0.0 }
 0xb6c   :  { %1239 = vadd.xlane.f32.xlu1 %v1238_v35 }
 0xb6e   :  { %v1231_v36 = vpop.xlane.xlu1 %1230 }
 0xb6f   :  { %v1233_v32 = vsub.f32 %v1225_v8, %v1231_v36 }
 0xb71   :  { %v1236_v40 = vmul.f32 1.442695, %v1233_v32 }
 0xb80   :  { %v1389_v37 = vpop.xlane.xlu2 %1388 }
 0xb81   :  { %v1391_v31 = vsub.f32 %v1383_v3, %v1389_v37 }
 0xb83   :  { %v1394_v38 = vmul.f32 1.442695, %v1391_v31 }
 0xb85   :  { %2319 = vpow2.f32 %v1394_v38 }
 0xb86   :  { %2321 = vpow2.f32 %v1236_v40  ;;  %v1702_v63 = vpop.xlane.xlu1 %1701 }
 0xb87   :  { %v1706_v1 = vsub.f32 %v2858_v18, %v1702_v63 }
 0xb88   :  { %v1547_v41 = vpop.xlane.xlu0 %1546  ;;  %v1386_v42 = vpop.xlane.xlu2 %1385 }
 0xb89   :  { %v1549_v43 = vsub.f32 %v1541_v15, %v1547_v41  ;;  %v1390_v45 = vsub.f32 %v1382_v16, %v1386_v42  ;;  %v1708_v4 = vmul.f32 1.442695, %v1706_v1 }
 0xb8b   :  { %v2874_v46 = vpop.eup %2319  ;;  %v1552_v48 = vmul.f32 1.442695, %v1549_v43  ;;  %v1392_v50 = vmul.f32 1.442695, %v1390_v45 }
 0xb8c   :  { %v1399_v6 = vsel %vm256_vm9, %v2874_v46, 0.0  ;;  %v2878_v51 = vpop.eup %2321 }
 0xb8d   :  { %2323 = vpow2.f32 %v1552_v48  ;;  %1400 = vadd.xlane.f32.xlu2 %v1399_v6  ;;  %v1241_v60 = vsel %vm256_vm9, %v2878_v51, 0.0 }
 0xb8e   :  { %2325 = vpow2.f32 %v1392_v50 }
 0xb90   :  { %v1705_v17 = vpop.xlane.xlu2 %1704  ;;  %v1544_v52 = vpop.xlane.xlu0 %1543 }
 0xb91   :  { %v1707_v53 = vsub.f32 %v1699_v24, %v1705_v17  ;;  %v1548_v57 = vsub.f32 %v1540_v20, %v1544_v52 }
 0xb93   :  { %v2880_v54 = vpop.eup %2323  ;;  %v1710_v55 = vmul.f32 1.442695, %v1707_v53  ;;  %v1550_v62 = vmul.f32 1.442695, %v1548_v57 }
 0xb94   :  { %v2882_v56 = vpop.eup %2325  ;;  %v1557_v58 = vsel %vm256_vm9, %v2880_v54, 0.0 }
 0xb95   :  { %1558 = vadd.xlane.f32.xlu1 %v1557_v58  ;;  %1242 = vadd.xlane.f32.xlu2 %v1241_v60  ;;  %v1396_v61 = vsel %vm256_vm9, %v2882_v56, 0.0  ;;  %2327 = vpow2.f32 %v1710_v55 }
 0xb96   :  { %1397 = vadd.xlane.f32.xlu0 %v1396_v61  ;;  %2329 = vpow2.f32 %v1550_v62 }
 0xb97   :  { %2331 = vpow2.f32 %v1708_v4 }
 0xb98   :  { %v1433_v59 = vpop.permute.xlu2 %1432 }
 0xb99   :  { %1453 = vmatpush.msrb.mxu3 %v1433_v59 }
 0xb9b   :  { %v2890_v0 = vpop.eup %2327 }
 0xb9c   :  { %v1715_v2 = vsel %vm256_vm9, %v2890_v0, 0.0  ;;  %v2895_v5 = vpop.eup %2329 }
 0xb9d   :  { %1716 = vadd.xlane.f32.xlu1 %v1715_v2  ;;  %v1554_v7 = vsel %vm256_vm9, %v2895_v5, 0.0  ;;  %v2899_v8 = vpop.eup %2331 }
 0xb9e   :  { %v1712_v10 = vsel %vm256_vm9, %v2899_v8, 0.0 }
 0xba3   :  { %v1591_v23 = vpop.permute.xlu0 %1590 }
 0xba5   :  { %1555 = vadd.xlane.f32.xlu1 %v1554_v7 }
 0xbaa   :  { %1458 = vrot.lane.b32.xlu0 %v2808_v49, %s2505_s16 }
 0xbad   :  { %1616 = vrot.lane.b32.xlu2 %v2808_v49, %s2506_s17  ;;  %1713 = vadd.xlane.f32.xlu1 %v1712_v10 }
 0xbb2   :  { %1774 = vrot.lane.b32.xlu0 %v2808_v49, %s2504_s15 }
 0xbc6   :  { %1748 = vrot.lane.b32.xlu1 %v2802_v47, %s2504_s15 }
 0xbdf   :  { %v1240_v9 = vpop.xlane.xlu1 %1239 }
 0xbe0   :  { %2333 = vrcp.f32 %v1240_v9  ;;  %v1255_v13 = vand.u32 2147483648, %v1240_v9  ;;  %v1253_v16 = vand.u32 2147483647, %v1240_v9  ;;  %vm1249_vm5 = vweird.f32 %v1240_v9 }
 0xbe2   :  { %v1256_v19 = vor.u32 1.1754944e-38, %v1255_v13  ;;  %vm1254_vm7 = vcmp.eq.f32.partialorder %v1253_v16, 8.507059e+37 }
 0xbe6   :  { %v2334_v11 = vpop.eup %2333 }
 0xbe7   :  { %v1245_v12 = vmul.f32 %v2334_v11, %v1240_v9  ;;  %vm1250_vm4 = vweird.f32 %v2334_v11 }
 0xbe8   :  { %vm1251_vm6 = vmor %vm1249_vm5, %vm1250_vm4 }
 0xbe9   :  { %v1246_v3 = vsub.f32 1.0, %v1245_v12 }
 0xbeb   :  { %v1247_v14 = vmul.f32 %v2334_v11, %v1246_v3 }
 0xbed   :  { %v1248_v18 = vadd.f32 %v2334_v11, %v1247_v14 }
 0xbef   :  { %v1252_v15 = vsel %vm1251_vm6, %v2334_v11, %v1248_v18 }
 0xbf0   :  { %v1257_v22 = vsel %vm1254_vm7, %v1256_v19, %v1252_v15 }
 0xbf1   :  { %v1258_v49 = vmul.f32 %v2870_v34, %v1257_v22 }
 0xbf3   :  { %2177 = vmatmul.msk.f32.vlgmr.msra.gmra.mxu3 %vm256_vm9, %v1258_v49 }
 0xbf4   :  { %1611 = vmatpush.msra.mxu3 %v1591_v23 }
 0xc00   :  { %v2913_v47 = vpop.xlane.xlu2 %1400 }
 0xc01   :  { %2335 = vrcp.f32 %v2913_v47  ;;  %v1428_v59 = vand.u32 2147483648, %v2913_v47  ;;  %vm1422_vm6 = vweird.f32 %v2913_v47  ;;  %v1426_v1 = vand.u32 2147483647, %v2913_v47 }
 0xc03   :  { %v1429_v3 = vor.u32 1.1754944e-38, %v1428_v59 }
 0xc07   :  { %v2918_v27 = vpop.eup %2335 }
 0xc08   :  { %v2916_v21 = vpop.xlane.xlu1 %1558  ;;  %v1243_v20 = vpop.xlane.xlu2 %1242  ;;  %v1418_v25 = vmul.f32 %v2918_v27, %v2913_v47  ;;  %vm1423_vm12 = vweird.f32 %v2918_v27 }
 0xc09   :  { %v1398_v24 = vpop.xlane.xlu0 %1397  ;;  %v1268_v41 = vand.u32 2147483647, %v1243_v20  ;;  %v1270_v43 = vand.u32 2147483648, %v1243_v20  ;;  %vm1264_vm3 = vweird.f32 %v1243_v20  ;;  %vm1424_vm7 = vmor %vm1422_vm6, %vm1423_vm12  ;;  %v1586_v19 = vand.u32 2147483648, %v2916_v21 }
 0xc0a   :  { %2337 = vrcp.f32 %v1398_v24  ;;  %v1419_v29 = vsub.f32 1.0, %v1418_v25  ;;  %v1411_v31 = vand.u32 2147483647, %v1398_v24  ;;  %v1413_v38 = vand.u32 2147483648, %v1398_v24 }
 0xc0b   :  { %2339 = vrcp.f32 %v1243_v20  ;;  %vm1407_vm13 = vweird.f32 %v1398_v24  ;;  %vm1269_vm5 = vcmp.eq.f32.partialorder %v1268_v41, 8.507059e+37  ;;  %v1271_v55 = vor.u32 1.1754944e-38, %v1270_v43 }
 0xc0c   :  { %2341 = vrcp.f32 %v2916_v21  ;;  %v1420_v32 = vmul.f32 %v2918_v27, %v1419_v29  ;;  %vm1412_vm15 = vcmp.eq.f32.partialorder %v1411_v31, 8.507059e+37  ;;  %v1414_v6 = vor.u32 1.1754944e-38, %v1413_v38 }
 0xc0d   :  { %vm1580_vm12 = vweird.f32 %v2916_v21  ;;  %v1584_v22 = vand.u32 2147483647, %v2916_v21 }
 0xc0e   :  { %v1421_v52 = vadd.f32 %v2918_v27, %v1420_v32 }
 0xc10   :  { %v2338_v26 = vpop.eup %2337  ;;  %v2923_v34 = vpop.xlane.xlu1 %1716  ;;  %v1425_v10 = vsel %vm1424_vm7, %v2918_v27, %v1421_v52 }
 0xc11   :  { %v2340_v30 = vpop.eup %2339  ;;  %v1403_v33 = vmul.f32 %v2338_v26, %v1398_v24  ;;  %vm1408_vm8 = vweird.f32 %v2338_v26  ;;  %2343 = vrcp.f32 %v2923_v34  ;;  %v1617_v12 = vpop.permute.xlu2 %1616  ;;  %v1744_v32 = vand.u32 2147483648, %v2923_v34 }
 0xc12   :  { %v1260_v35 = vmul.f32 %v2340_v30, %v1243_v20  ;;  %v2925_v36 = vpop.eup %2341  ;;  %vm1265_vm11 = vweird.f32 %v2340_v30  ;;  %vm1409_vm14 = vmor %vm1407_vm13, %vm1408_vm8  ;;  %vm1427_vm8 = vcmp.eq.f32.partialorder %v1426_v1, 8.507059e+37  ;;  %vm1738_vm7 = vweird.f32 %v2923_v34  ;;  %v1833_v1 = vld [vmem:[#allocation7 + $0x108] sm:$0xff] }
 0xc13   :  { %v1404_v37 = vsub.f32 1.0, %v1403_v33  ;;  %v1576_v45 = vmul.f32 %v2925_v36, %v2916_v21  ;;  %vm1266_vm4 = vmor %vm1264_vm3, %vm1265_vm11  ;;  %vm1581_vm11 = vweird.f32 %v2925_v36  ;;  %v1587_v21 = vor.u32 1.1754944e-38, %v1586_v19  ;;  %1854 = vmatpush.msrb.mxu2 %v1833_v1 }
 0xc14   :  { %v1261_v40 = vsub.f32 1.0, %v1260_v35  ;;  %vm2954_vm13 = vmor %vm1580_vm12, %vm1581_vm11  ;;  %vm1585_vm3 = vcmp.eq.f32.partialorder %v1584_v22, 8.507059e+37  ;;  %v1742_v41 = vand.u32 2147483647, %v2923_v34 }
 0xc15   :  { %v1405_v42 = vmul.f32 %v2338_v26, %v1404_v37  ;;  %v1577_v58 = vsub.f32 1.0, %v1576_v45 }
 0xc16   :  { %v1262_v48 = vmul.f32 %v2340_v30, %v1261_v40  ;;  %vm1743_vm12 = vcmp.eq.f32.partialorder %v1742_v41, 8.507059e+37 }
 0xc17   :  { %v1406_v50 = vadd.f32 %v2338_v26, %v1405_v42  ;;  %v2933_v62 = vpop.eup %2343  ;;  %v1578_v9 = vmul.f32 %v2925_v36, %v1577_v58 }
 0xc18   :  { %v1263_v17 = vadd.f32 %v2340_v30, %v1262_v48  ;;  %v1556_v57 = vpop.xlane.xlu1 %1555  ;;  %v1734_v11 = vmul.f32 %v2933_v62, %v2923_v34  ;;  %vm1739_vm6 = vweird.f32 %v2933_v62  ;;  %v1745_v48 = vor.u32 1.1754944e-38, %v1744_v32  ;;  %v1920_v32 = vld [vmem:[#allocation7 + $0x118] sm:$0xff] }
 0xc19   :  { %v1410_v53 = vsel %vm1409_vm14, %v2338_v26, %v1406_v50  ;;  %2345 = vrcp.f32 %v1556_v57  ;;  %v1579_v16 = vadd.f32 %v2925_v36, %v1578_v9  ;;  %v1571_v49 = vand.u32 2147483648, %v1556_v57 }
 0xc1a   :  { %v1415_v60 = vsel %vm1412_vm15, %v1414_v6, %v1410_v53  ;;  %v1267_v61 = vsel %vm1266_vm4, %v2340_v30, %v1263_v17  ;;  %v1735_v18 = vsub.f32 1.0, %v1734_v11  ;;  %v1569_v24 = vand.u32 2147483647, %v1556_v57 }
 0xc1b   :  { %v1272_v63 = vsel %vm1269_vm5, %v1271_v55, %v1267_v61  ;;  %v1416_v7 = vmul.f32 %v2882_v56, %v1415_v60  ;;  %v1430_v56 = vsel %vm1427_vm8, %v1429_v3, %v1425_v10  ;;  %v1583_v25 = vsel %vm2954_vm13, %v2925_v36, %v1579_v16  ;;  %vm1740_vm8 = vmor %vm1738_vm7, %vm1739_vm6 }
 0xc1c   :  { %v1459_v2 = vpop.permute.xlu0 %1458  ;;  %v1273_v4 = vmul.f32 %v2878_v51, %v1272_v63  ;;  %v1431_v47 = vmul.f32 %v2874_v46, %v1430_v56  ;;  %v1736_v26 = vmul.f32 %v2933_v62, %v1735_v18  ;;  %vm1565_vm15 = vweird.f32 %v1556_v57 }
 0xc1d   :  { %1479 = vmatpush.msra.mxu1 %v1459_v2  ;;  %2183 = vmatmul.msk.f32.vlgmr.msrb.gmra.mxu3 %vm256_vm9, %v1416_v7  ;;  %v1572_v30 = vor.u32 1.1754944e-38, %v1571_v49  ;;  %v1588_v33 = vsel %vm1585_vm3, %v1587_v21, %v1583_v25  ;;  %vm1570_vm5 = vcmp.eq.f32.partialorder %v1569_v24, 8.507059e+37  ;;  %v1832_v2 = vld [vmem:[#allocation7 + $0x100] sm:$0xff]  ;;  %v1830_v7 = vld [vmem:[#allocation7 + $0xf0] sm:$0xff] }
 0xc1e   :  { %2178 = vmatmul.msk.f32.vlgmr.msrb.gmra.mxu1 %vm256_vm9, %v1273_v4  ;;  %v1737_v31 = vadd.f32 %v2933_v62, %v1736_v26  ;;  %v1589_v42 = vmul.f32 %v2880_v54, %v1588_v33  ;;  %1855 = vmatpush.msrb.mxu2 %v1832_v2  ;;  %v1831_v4 = vld [vmem:[#allocation7 + $0xf8] sm:$0xff] }
 0xc1f   :  { %1637 = vmatpush.msrb.mxu1 %v1617_v12  ;;  %v2346_v51 = vpop.eup %2345 }
 0xc20   :  { %v1561_v13 = vmul.f32 %v2346_v51, %v1556_v57  ;;  %v1714_v14 = vpop.xlane.xlu1 %1713  ;;  %vm1566_vm14 = vweird.f32 %v2346_v51  ;;  %v1741_v45 = vsel %vm1740_vm8, %v2933_v62, %v1737_v31  ;;  %1856 = vmatpush.msrb.mxu2 %v1831_v4 }
 0xc21   :  { %2347 = vrcp.f32 %v1714_v14  ;;  %vm1567_vm4 = vmor %vm1565_vm15, %vm1566_vm14  ;;  %v1729_v6 = vand.u32 2147483648, %v1714_v14  ;;  %vm1723_vm13 = vweird.f32 %v1714_v14  ;;  %v1727_v17 = vand.u32 2147483647, %v1714_v14 }
 0xc22   :  { %v1562_v15 = vsub.f32 1.0, %v1561_v13  ;;  %1857 = vmatpush.msrb.mxu2 %v1830_v7 }
 0xc23   :  { %v1730_v52 = vor.u32 1.1754944e-38, %v1729_v6  ;;  %vm1728_vm15 = vcmp.eq.f32.partialorder %v1727_v17, 8.507059e+37 }
 0xc24   :  { %v1775_v23 = vpop.permute.xlu0 %1774  ;;  %v1563_v27 = vmul.f32 %v2346_v51, %v1562_v15  ;;  %v2263_v15 = vld [vmem:[#allocation8 + $0x68] ss:$0 sm:$0xff] }
 0xc26   :  { %2184 = vmatmul.msk.f32.vlgmr.msra.gmra.mxu1 %vm256_vm9, %v1431_v47  ;;  %v1564_v29 = vadd.f32 %v2346_v51, %v1563_v27 }
 0xc27   :  { %1795 = vmatpush.msra.mxu1 %v1775_v23  ;;  %v2348_v46 = vpop.eup %2347 }
 0xc28   :  { %v1568_v35 = vsel %vm1567_vm4, %v2346_v51, %v1564_v29  ;;  %v1719_v37 = vmul.f32 %v2348_v46, %v1714_v14  ;;  %vm1724_vm11 = vweird.f32 %v2348_v46 }
 0xc29   :  { %v1573_v36 = vsel %vm1570_vm5, %v1572_v30, %v1568_v35  ;;  %vm1725_vm14 = vmor %vm1723_vm13, %vm1724_vm11 }
 0xc2a   :  { %v1720_v38 = vsub.f32 1.0, %v1719_v37  ;;  %v1574_v40 = vmul.f32 %v2895_v5, %v1573_v36  ;;  %v1746_v5 = vsel %vm1743_vm12, %v1745_v48, %v1741_v45  ;;  %v1921_v36 = vld [vmem:[#allocation7 + $0x120] sm:$0xff]  ;;  %v1961_v48 = vld [vmem:[#allocation7 + $0x158] sm:$0xff] }
 0xc2b   :  { %v1747_v54 = vmul.f32 %v2890_v0, %v1746_v5  ;;  %v1962_v45 = vld [vmem:[#allocation7 + $0x160] sm:$0xff]  ;;  %v1960_v5 = vld [vmem:[#allocation7 + $0x150] sm:$0xff] }
 0xc2c   :  { %v1721_v43 = vmul.f32 %v2348_v46, %v1720_v38  ;;  %2189 = vmatmul.msk.f32.vlgmr.msra.gmra.mxu3 %vm256_vm9, %v1574_v40  ;;  %v1919_v38 = vld [vmem:[#allocation7 + $0x110] sm:$0xff] }
 0xc2e   :  { %2190 = vmatmul.msk.f32.vlgmr.msrb.gmra.mxu1 %vm256_vm9, %v1589_v42  ;;  %v1722_v50 = vadd.f32 %v2348_v46, %v1721_v43  ;;  %v1963_v43 = vld [vmem:[#allocation7 + $0x168] sm:$0xff] }
 0xc30   :  { %v1726_v34 = vsel %vm1725_vm14, %v2348_v46, %v1722_v50  ;;  %vm2066_vm14 = vcmask 1041409  }
 0xc31   :  { %v1731_v53 = vsel %vm1728_vm15, %v1730_v52, %v1726_v34 }
 0xc32   :  { %v1732_v57 = vmul.f32 %v2899_v8, %v1731_v53 }
 0xc36   :  { %2196 = vmatmul.msk.f32.vlgmr.msra.gmra.mxu1 %vm256_vm9, %v1747_v54  ;;  %v1959_v54 = vld [vmem:[#allocation7 + $0x148] sm:$0xff] }
 0xc38   :  { %v1749_v55 = vpop.permute.xlu1 %1748 }
 0xc39   :  { %1769 = vmatpush.msrb.mxu3 %v1749_v55 }
 0xc3a   :  { %2195 = vmatmul.msk.f32.vlgmr.msrb.gmra.mxu3 %vm256_vm9, %v1732_v57 }
 0xc3b   :  { %1980 = vmatpush.msra.mxu3 %v1963_v43 }
 0xc3d   :  { %1981 = vmatpush.msra.mxu3 %v1962_v45 }
 0xc3f   :  { %1982 = vmatpush.msra.mxu3 %v1961_v48 }
 0xc41   :  { %1983 = vmatpush.msra.mxu3 %v1960_v5 }
 0xc43   :  { %1984 = vmatpush.msra.mxu3 %v1959_v54 }
 0xc76   :  { %v1297_v58 = vpop.f32.mrf.mxu3 }
 0xc9b   :  { %v1323_v60 = vpop.f32.mrf.mxu1 }
 0xca0   :  { %v1455_v61 = vpop.f32.mrf.mxu3 }
 0xca1   :  { %1802 = vrot.lane.b32.xlu2 %v1455_v61, %s2491_s24  ;;  %v2264_v61 = vld [vmem:[#allocation8 + $0x70] ss:$0 sm:$0xff] }
 0xca3   :  { %v1481_v62 = vpop.f32.mrf.mxu1 }
 0xcab   :  { %v1639_v59 = vpop.f32.mrf.mxu1 }
 0xcac   :  { %1812 = vrot.lane.b32.xlu1 %v1639_v59, %s2507_s18 }
 0xcaf   :  { %v1613_v0 = vpop.f32.mrf.mxu3 }
 0xcb0   :  { %1810 = vrot.lane.b32.xlu0 %v1613_v0, %s2507_s18 }
 0xcb3   :  { %v1797_v8 = vpop.f32.mrf.mxu1 }
 0xcb8   :  { %1804 = vrot.lane.b32.xlu0 %v1481_v62, %s2491_s24  ;;  %s2123_s24 = sshll.u32 %s3028_s4, 4  ;;  %s2124_s24 = int_to_ptr.hbm [resolvable:$true] %s2123_s24 }
 0xcbd   :  { %v1771_v63 = vpop.f32.mrf.mxu3 }
 0xcbe   :  { %1818 = vrot.lane.b32.xlu2 %v1771_v63, %s2508_s19 }
 0xcc6   :  { %1820 = vrot.lane.b32.xlu2 %v1797_v8, %s2508_s19  ;;  %v2265_v8 = vld [vmem:[#allocation8 + $0x78] ss:$0 sm:$0xff] }
 0xcfb   :  { %v1803_v10 = vpop.permute.xlu2 %1802 }
 0xcfc   :  { %v1824_v9 = vsel %vm256_vm9, %v1297_v58, %v1803_v10 }
 0xd18   :  { %v1819_v11 = vpop.permute.xlu2 %1818 }
 0xd1e   :  { %v1813_v13 = vpop.permute.xlu1 %1812 }
 0xd20   :  { %v1821_v16 = vpop.permute.xlu2 %1820 }
 0xd22   :  { %v1811_v12 = vpop.permute.xlu0 %1810 }
 0xd23   :  { %v1826_v3 = vsel %vm87_vm0, %v1824_v9, %v1811_v12 }
 0xd24   :  { %v1828_v51 = vsel %vm912_vm2, %v1826_v3, %v1819_v11 }
 0xd25   :  { %2197 = vmatmul.msk.f32.vlgmr.msrb.gmra.mxu2 %vm125_vm1, %v1828_v51  ;;  %v1958_v51 = vld [vmem:[#allocation7 + $0x140] sm:$0xff] }
 0xd26   :  { %1985 = vmatpush.msra.mxu3 %v1958_v51 }
 0xd2a   :  { %v1805_v56 = vpop.permute.xlu0 %1804 }
 0xd2b   :  { %v1825_v14 = vsel %vm256_vm9, %v1323_v60, %v1805_v56  ;;  %v1957_v56 = vld [vmem:[#allocation7 + $0x138] sm:$0xff] }
 0xd2c   :  { %v1827_v18 = vsel %vm87_vm0, %v1825_v14, %v1813_v13  ;;  %v1956_v13 = vld [vmem:[#allocation7 + $0x130] sm:$0xff]  ;;  %1986 = vmatpush.msra.mxu3 %v1957_v56  ;;  %v2266_v14 = vld [vmem:[#allocation8 + $0x80] ss:$0 sm:$0xff] }
 0xd2d   :  { %v1829_v19 = vsel %vm912_vm2, %v1827_v18, %v1821_v16 }
 0xd2e   :  { %2198 = vmatmul.msk.f32.gmra.mxu2 %vm125_vm1, %v1829_v19  ;;  %1987 = vmatpush.msra.mxu3 %v1956_v13 }
 0xda8   :  { %v1859_v22 = vpop.f32.mrf.mxu2 }
 0xda9   :  { %v1860_v49 = vadd.f32 %v2263_v15, %v1859_v22 }
 0xdab   :  { %v1865_v23 = vadd.f32 %v1860_v49, %v2794_v39 }
 0xdad   :  { %v1869_v47 = vsel %vm125_vm1, %v1865_v23, 0.0 }
 0xdae   :  { %1870 = vadd.xlane.f32.xlu0 %v1869_v47 }
 0xdb1   :  { %v1862_v20 = vpop.f32.mrf.mxu2 }
 0xdb2   :  { %v1863_v27 = vadd.f32 %v2263_v15, %v1862_v20 }
 0xdb4   :  { %v1866_v24 = vadd.f32 %v1863_v27, %v2798_v44  ;;  %v1922_v44 = vld [vmem:[#allocation7 + $0x128] sm:$0xff] }
 0xdb5   :  { %1943 = vmatpush.msrb.mxu0 %v1922_v44 }
 0xdb6   :  { %v1872_v25 = vsel %vm125_vm1, %v1866_v24, 0.0 }
 0xdb7   :  { %1873 = vadd.xlane.f32.xlu1 %v1872_v25  ;;  %1944 = vmatpush.msrb.mxu0 %v1921_v36 }
 0xdb9   :  { %1945 = vmatpush.msrb.mxu0 %v1920_v32 }
 0xdbb   :  { %1946 = vmatpush.msrb.mxu0 %v1919_v38 }
 0xe21   :  { %v1871_v26 = vpop.xlane.xlu0 %1870 }
 0xe22   :  { %v1875_v21 = vmul.f32 %v1871_v26, %v2557_v28 }
 0xe24   :  { %v1877_v29 = vsub.f32 %v1865_v23, %v1875_v21  ;;  %v2267_v23 = vld [vmem:[#allocation8 + $0x88] ss:$0 sm:$0xff] }
 0xe26   :  { %v1879_v46 = vmul.f32 %v1877_v29, %v1877_v29 }
 0xe28   :  { %v1881_v30 = vsel %vm125_vm1, %v1879_v46, 0.0 }
 0xe29   :  { %1882 = vadd.xlane.f32.xlu2 %v1881_v30 }
 0xe2a   :  { %v1874_v33 = vpop.xlane.xlu1 %1873 }
 0xe2b   :  { %v1876_v39 = vmul.f32 %v1874_v33, %v2557_v28 }
 0xe2d   :  { %v1878_v35 = vsub.f32 %v1866_v24, %v1876_v39 }
 0xe2f   :  { %v1880_v37 = vmul.f32 %v1878_v35, %v1878_v35 }
 0xe31   :  { %v1884_v31 = vsel %vm125_vm1, %v1880_v37, 0.0 }
 0xe32   :  { %1885 = vadd.xlane.f32.xlu0 %v1884_v31 }
 0xe9c   :  { %v1883_v40 = vpop.xlane.xlu2 %1882 }
 0xe9d   :  { %v1887_v41 = vmul.f32 %v1883_v40, %v2557_v28 }
 0xe9f   :  { %v1889_v42 = vadd.f32 1e-05, %v1887_v41 }
 0xea1   :  { %2349 = vrsqrt.f32 %v1889_v42  ;;  %vm1897_vm2 = vweird.f32 %v1889_v42 }
 0xea5   :  { %v1886_v50 = vpop.xlane.xlu0 %1885 }
 0xea6   :  { %v1888_v6 = vmul.f32 %v1886_v50, %v2557_v28 }
 0xea7   :  { %v2350_v17 = vpop.eup %2349 }
 0xea8   :  { %v1892_v34 = vmul.f32 %v2350_v17, %v1889_v42  ;;  %v1890_v52 = vadd.f32 1e-05, %v1888_v6  ;;  %vm1898_vm0 = vweird.f32 %v2350_v17 }
 0xea9   :  { %vm1899_vm3 = vmor %vm1897_vm2, %vm1898_vm0 }
 0xeaa   :  { %v1893_v53 = vmul.f32 %v2350_v17, %v1892_v34  ;;  %2351 = vrsqrt.f32 %v1890_v52  ;;  %vm1907_vm5 = vweird.f32 %v1890_v52 }
 0xeac   :  { %v1894_v55 = vmul.f32 0.5, %v1893_v53  ;;  %v2268_v53 = vld [vmem:[#allocation8 + $0x90] ss:$0 sm:$0xff] }
 0xeae   :  { %v1895_v57 = vsub.f32 1.5, %v1894_v55 }
 0xeb0   :  { %v2352_v58 = vpop.eup %2351  ;;  %v1896_v60 = vmul.f32 %v2350_v17, %v1895_v57 }
 0xeb1   :  { %v1902_v62 = vmul.f32 %v2352_v58, %v1890_v52  ;;  %vm1908_vm4 = vweird.f32 %v2352_v58 }
 0xeb2   :  { %v1900_v59 = vsel %vm1899_vm3, %v2350_v17, %v1896_v60  ;;  %vm1909_vm6 = vmor %vm1907_vm5, %vm1908_vm4  ;;  %v2269_v60 = vld [vmem:[#allocation8 + $0x98] ss:$0 sm:$0xff] }
 0xeb3   :  { %v1911_v0 = vmul.f32 %v1900_v59, %v1877_v29  ;;  %v1903_v63 = vmul.f32 %v2352_v58, %v1902_v62 }
 0xeb5   :  { %v1914_v1 = vmul.f32 %v2264_v61, %v1911_v0  ;;  %v1904_v2 = vmul.f32 0.5, %v1903_v63 }
 0xeb7   :  { %v1905_v4 = vsub.f32 1.5, %v1904_v2  ;;  %v1917_v7 = vadd.f32 %v2265_v8, %v1914_v1 }
 0xeb9   :  { %v1906_v10 = vmul.f32 %v2352_v58, %v1905_v4  ;;  %2199 = vmatmul.msk.f32.vlgmr.msrb.gmra.mxu0 %vm125_vm1, %v1917_v7 }
 0xebb   :  { %v1910_v9 = vsel %vm1909_vm6, %v2352_v58, %v1906_v10 }
 0xebc   :  { %v1912_v11 = vmul.f32 %v1910_v9, %v1878_v35  ;;  %v2057_v9 = vld [vmem:[#allocation7 + $0x170] sm:$0xff] }
 0xebd   :  { %2085 = vmatpush.msrb.mxu1 %v2057_v9 }
 0xebe   :  { %v1915_v12 = vmul.f32 %v2264_v61, %v1912_v11  ;;  %v2062_v11 = vlaneseq }
 0xec0   :  { %v1918_v3 = vadd.f32 %v2265_v8, %v1915_v12 }
 0xec2   :  { %2200 = vmatmul.msk.f32.gmra.mxu0 %vm125_vm1, %v1918_v3 }
 0xf36   :  { %v1948_v16 = vpop.f32.mrf.mxu0 }
 0xf37   :  { %v1949_v18 = vadd.f32 %v2266_v14, %v1948_v16 }
 0xf39   :  { %v1954_v19 = vmax.f32 %v1949_v18, 0.0 }
 0xf3b   :  { %2201 = vmatmul.msk.f32.vlgmr.msra.gmra.mxu3 %vm1051_vm10, %v1954_v19  ;;  %v2270_v19 = vld [vmem:[#allocation8 + $0xa0] ss:$0 sm:$0xff] }
 0xf3f   :  { %v1951_v15 = vpop.f32.mrf.mxu0 }
 0xf40   :  { %v1952_v22 = vadd.f32 %v2266_v14, %v1951_v15 }
 0xf42   :  { %v1955_v49 = vmax.f32 %v1952_v22, 0.0 }
 0xf44   :  { %2202 = vmatmul.msk.f32.gmra.mxu3 %vm1051_vm10, %v1955_v49 }
 0xfbe   :  { %v1989_v47 = vpop.f32.mrf.mxu3 }
 0xfbf   :  { %v1990_v20 = vadd.f32 %v2267_v23, %v1989_v47 }
 0xfc1   :  { %v1995_v27 = vadd.f32 %v1990_v20, %v1917_v7 }
 0xfc3   :  { %v1999_v24 = vsel %vm125_vm1, %v1995_v27, 0.0 }
 0xfc4   :  { %2000 = vadd.xlane.f32.xlu1 %v1999_v24 }
 0xfc7   :  { %v1992_v25 = vpop.f32.mrf.mxu3 }
 0xfc8   :  { %v1993_v26 = vadd.f32 %v2267_v23, %v1992_v25 }
 0xfca   :  { %v1996_v21 = vadd.f32 %v1993_v26, %v1918_v3  ;;  %v2063_v3 = vand.u32 127, %v2062_v11 }
 0xfcc   :  { %v2002_v29 = vsel %vm125_vm1, %v1996_v21, 0.0 }
 0xfcd   :  { %2003 = vadd.xlane.f32.xlu2 %v2002_v29 }
0x1037   :  { %v2001_v46 = vpop.xlane.xlu1 %2000 }
0x1038   :  { %v2005_v30 = vmul.f32 %v2001_v46, %v2557_v28 }
0x103a   :  { %v2007_v33 = vsub.f32 %v1995_v27, %v2005_v30 }
0x103c   :  { %v2009_v39 = vmul.f32 %v2007_v33, %v2007_v33 }
0x103e   :  { %v2011_v35 = vsel %vm125_vm1, %v2009_v39, 0.0 }
0x103f   :  { %2012 = vadd.xlane.f32.xlu0 %v2011_v35 }
0x1040   :  { %v2004_v37 = vpop.xlane.xlu2 %2003 }
0x1041   :  { %v2006_v31 = vmul.f32 %v2004_v37, %v2557_v28 }
0x1043   :  { %v2008_v44 = vsub.f32 %v1996_v21, %v2006_v31 }
0x1045   :  { %v2010_v36 = vmul.f32 %v2008_v44, %v2008_v44 }
0x1047   :  { %v2014_v32 = vsel %vm125_vm1, %v2010_v36, 0.0 }
0x1048   :  { %2015 = vadd.xlane.f32.xlu1 %v2014_v32 }
0x10b2   :  { %v2013_v38 = vpop.xlane.xlu0 %2012 }
0x10b3   :  { %v2017_v40 = vmul.f32 %v2013_v38, %v2557_v28 }
0x10b5   :  { %v2019_v41 = vadd.f32 1e-05, %v2017_v40 }
0x10b7   :  { %2353 = vrsqrt.f32 %v2019_v41  ;;  %vm2027_vm7 = vweird.f32 %v2019_v41 }
0x10bb   :  { %v2016_v42 = vpop.xlane.xlu1 %2015 }
0x10bc   :  { %v2018_v43 = vmul.f32 %v2016_v42, %v2557_v28 }
0x10bd   :  { %v2354_v45 = vpop.eup %2353 }
0x10be   :  { %v2022_v48 = vmul.f32 %v2354_v45, %v2019_v41  ;;  %v2020_v50 = vadd.f32 1e-05, %v2018_v43  ;;  %vm2028_vm10 = vweird.f32 %v2354_v45 }
0x10bf   :  { %vm2029_vm8 = vmor %vm2027_vm7, %vm2028_vm10 }
0x10c0   :  { %v2023_v6 = vmul.f32 %v2354_v45, %v2022_v48  ;;  %2355 = vrsqrt.f32 %v2020_v50  ;;  %vm2037_vm12 = vweird.f32 %v2020_v50 }
0x10c2   :  { %v2024_v5 = vmul.f32 0.5, %v2023_v6 }
0x10c4   :  { %v2025_v17 = vsub.f32 1.5, %v2024_v5 }
0x10c6   :  { %v2356_v34 = vpop.eup %2355  ;;  %v2026_v52 = vmul.f32 %v2354_v45, %v2025_v17 }
0x10c7   :  { %v2032_v54 = vmul.f32 %v2356_v34, %v2020_v50  ;;  %vm2038_vm11 = vweird.f32 %v2356_v34 }
0x10c8   :  { %v2030_v55 = vsel %vm2029_vm8, %v2354_v45, %v2026_v52  ;;  %vm2039_vm13 = vmor %vm2037_vm12, %vm2038_vm11 }
0x10c9   :  { %v2033_v57 = vmul.f32 %v2356_v34, %v2032_v54  ;;  %v2041_v58 = vmul.f32 %v2030_v55, %v2007_v33 }
0x10cb   :  { %v2034_v61 = vmul.f32 0.5, %v2033_v57  ;;  %v2044_v62 = vmul.f32 %v2268_v53, %v2041_v58 }
0x10cd   :  { %v2035_v59 = vsub.f32 1.5, %v2034_v61  ;;  %v2047_v0 = vadd.f32 %v2269_v60, %v2044_v62 }
0x10cf   :  { %v2036_v63 = vmul.f32 %v2356_v34, %v2035_v59  ;;  %v2049_v8 = vsel %vm125_vm1, %v2047_v0, 0.0 }
0x10d0   :  { %2050 = vadd.xlane.f32.xlu2 %v2049_v8 }
0x10d1   :  { %v2040_v1 = vsel %vm2039_vm13, %v2356_v34, %v2036_v63 }
0x10d2   :  { %v2042_v2 = vmul.f32 %v2040_v1, %v2008_v44 }
0x10d4   :  { %v2045_v4 = vmul.f32 %v2268_v53, %v2042_v2 }
0x10d6   :  { %v2048_v7 = vadd.f32 %v2269_v60, %v2045_v4 }
0x10d8   :  { %v2052_v10 = vsel %vm125_vm1, %v2048_v7, 0.0  ;;  %vm2090_vm1 = vcmask 9216  }
0x10d9   :  { %2053 = vadd.xlane.f32.xlu0 %v2052_v10 }
0x1143   :  { %v2051_v12 = vpop.xlane.xlu2 %2050 }
0x1144   :  { %v2055_v51 = vmul.f32 %v2051_v12, %v2557_v28 }
0x1146   :  { %v2064_v14 = vperm.slane %v2055_v51, %v2063_v3 }
0x114c   :  { %v2054_v56 = vpop.xlane.xlu0 %2053 }
0x114d   :  { %v2056_v13 = vmul.f32 %v2054_v56, %v2557_v28 }
0x114f   :  { %v2065_v16 = vperm.slane %v2056_v13, %v2063_v3 }
0x1151   :  { %v2067_v18 = vsel %vm2066_vm14, %v2065_v16, %v2064_v14 }
0x1152   :  { %2203 = vmatmul.msk.f32.vlgmr.msrb.gmra.mxu1 %vm256_vm9, %v2067_v18 }
0x11cf   :  { %v2087_v15 = vpop.f32.mrf.mxu1 }
0x11d0   :  { %v2088_v22 = vadd.f32 %v2270_v19, %v2087_v15 }
0x11d2   :  { %v2091_v49 = vsel %vm2090_vm1, %v2088_v22, -inf }
0x11d3   :  { %2092 = vmax.xlane.f32.xlu1 %v2091_v49 }
0x1246   :  { %v2093_v23 = vpop.xlane.xlu1 %2092 }
0x1247   :  { %v2094_v47 = vsub.f32 %v2088_v22, %v2093_v23 }
0x1249   :  { %v2095_v20 = vmul.f32 1.442695, %v2094_v47 }
0x124b   :  { %2357 = vpow2.f32 %v2095_v20 }
0x1251   :  { %v2358_v27 = vpop.eup %2357 }
0x1252   :  { %v2097_v28 = vsel %vm2090_vm1, %v2358_v27, 0.0 }
0x1253   :  { %2098 = vadd.xlane.f32.xlu2 %v2097_v28 }
0x12c6   :  { %v2099_v24 = vpop.xlane.xlu2 %2098 }
0x12c7   :  { %2359 = vrcp.f32 %v2099_v24  ;;  %v2111_v29 = vand.u32 2147483648, %v2099_v24  ;;  %v2109_v30 = vand.u32 2147483647, %v2099_v24  ;;  %vm2105_vm15 = vweird.f32 %v2099_v24 }
0x12c9   :  { %v2112_v39 = vor.u32 1.1754944e-38, %v2111_v29  ;;  %vm2110_vm2 = vcmp.eq.f32.partialorder %v2109_v30, 8.507059e+37 }
0x12cd   :  { %v2360_v25 = vpop.eup %2359 }
0x12ce   :  { %v2101_v26 = vmul.f32 %v2360_v25, %v2099_v24  ;;  %vm2106_vm9 = vweird.f32 %v2360_v25 }
0x12cf   :  { %vm2107_vm0 = vmor %vm2105_vm15, %vm2106_vm9 }
0x12d0   :  { %v2102_v21 = vsub.f32 1.0, %v2101_v26 }
0x12d2   :  { %v2103_v46 = vmul.f32 %v2360_v25, %v2102_v21 }
0x12d4   :  { %v2104_v33 = vadd.f32 %v2360_v25, %v2103_v46 }
0x12d6   :  { %v2108_v35 = vsel %vm2107_vm0, %v2360_v25, %v2104_v33 }
0x12d7   :  { %v2113_v37 = vsel %vm2110_vm2, %v2112_v39, %v2108_v35 }
0x12d8   :  { %v2114_v31 = vmul.f32 %v2358_v27, %v2113_v37 }
0x12da   :  { %2115 = vst.msk [vmem:[#allocation10] sm:$0x3] %vm2090_vm1, %v2114_v31 }
0x12db   :  { %2126 = dma.vmem_to_hbm [thread:$0]  %s2122_s21, 32, %s2124_s24, [#allocation4]  }
0x12dc   :  { %2487 = dma.done.wait [#allocation4], 32  }
0x12dd   :  { %2488 = vsyncadd [#allocation4], 4294967264 }
0x12de   :  { %2131 = vsyncpa [#allocation3], 1 }
0x12df   :  { %2132 = vsyncpa [#allocation6], 1 }
0x12e0   :  { %2133 = vsyncpa [#allocation9], 1 }
0x12e1   :  { %2134 = vsyncpa [#allocation4], 1 }

</bundles_post_ra>
